<compile_context>
chip_gen: v7x
topology: tpu7x:2x2x1
jax: 0.10.0
libtpu: 0.0.40
codegen_flags: <defaults>
</compile_context>

<pallas_src>
import functools

import jax
import jax.numpy as jnp
from jax.experimental import pallas as pl
from jax.experimental.pallas import tpu as pltpu


def _round_up(x, m):
    return ((x + m - 1) // m) * m


def _coder_kernel(x_ref, w1_ref, b1_ref, w2_ref, b2_ref,
                  w3_ref, b3_ref, w4_ref, b4_ref,
                  out_ref, q_ref):
    # x tile cast to bf16; weights resident in VMEM as bf16; accumulate in f32.
    x = x_ref[...].astype(jnp.bfloat16)

    # ----- transform (encoder) -----
    h1 = jnp.dot(x, w1_ref[...], preferred_element_type=jnp.float32) + b1_ref[...]
    h1 = jnp.maximum(h1, 0.0)

    feat = jnp.dot(h1.astype(jnp.bfloat16), w2_ref[...],
                   preferred_element_type=jnp.float32) + b2_ref[...]
    feat = jnp.maximum(feat, 0.0)

    # ----- uniform quantizer (eval-mode branch) -----
    q = jnp.round(feat)
    q_ref[...] = q.astype(q_ref.dtype)

    # ----- inverse_transform (decoder) -----
    h2 = jnp.dot(q.astype(jnp.bfloat16), w3_ref[...],
                 preferred_element_type=jnp.float32) + b3_ref[...]
    h2 = jnp.maximum(h2, 0.0)

    logits = jnp.dot(h2.astype(jnp.bfloat16), w4_ref[...],
                     preferred_element_type=jnp.float32) + b4_ref[...]
    out_ref[...] = jax.nn.sigmoid(logits).astype(out_ref.dtype)


def prepare_params(params, hidden_pad=512, bottleneck_pad=128):
    """One-time prep: transpose PyTorch (out,in) weights to (in,out), zero-pad the
    392-wide hidden dim to 512 and the 8-wide bottleneck to 128, cast to bf16.

    Only arrays are returned (no Python scalars) so the dict can be passed as a
    traced pytree argument to the jitted wrapper; all static dims are recovered
    from the (static) array shapes inside the wrapper."""
    N_in = params["w1"].shape[1]       # 784
    N2 = params["w1"].shape[0]         # 392
    NB = params["w2"].shape[0]         # 8
    N_out = params["w4"].shape[0]      # 784
    H, NBP = hidden_pad, bottleneck_pad

    def pad_to(a, shape):
        return jnp.pad(a, [(0, s - d) for d, s in zip(a.shape, shape)])

    return {
        "w1": pad_to(params["w1"].T.astype(jnp.bfloat16), (N_in, H)),
        "b1": pad_to(params["b1"].reshape(1, N2).astype(jnp.float32), (1, H)),
        "w2": pad_to(params["w2"].T.astype(jnp.bfloat16), (H, NBP)),
        "b2": pad_to(params["b2"].reshape(1, NB).astype(jnp.float32), (1, NBP)),
        "w3": pad_to(params["w3"].T.astype(jnp.bfloat16), (NBP, H)),
        "b3": pad_to(params["b3"].reshape(1, N2).astype(jnp.float32), (1, H)),
        "w4": pad_to(params["w4"].T.astype(jnp.bfloat16), (H, N_out)),
        "b4": params["b4"].reshape(1, N_out).astype(jnp.float32),
    }


@functools.partial(jax.jit, static_argnames=("n_bottleneck", "tb_max"))
def mnist_coder_forward(x, prepared, *, n_bottleneck=8, tb_max=256):
    """x: (B, 784) float32. prepared: output of prepare_params. Returns (out, q)."""
    B = x.shape[0]
    # All dims below are static Python ints taken from array shapes.
    N_in, H = prepared["w1"].shape
    _, NBP = prepared["w2"].shape
    _, N_out = prepared["w4"].shape

    # Batch tile: fill the MXU M dim (up to 256), keep sublane (8) alignment.
    TB = min(tb_max, _round_up(max(B, 8), 8))
    B_pad = _round_up(B, TB)
    if B_pad != B:
        x = jnp.pad(x, ((0, B_pad - B), (0, 0)))

    grid = (B_pad // TB,)

    flops = int(2 * B_pad * (N_in * H + H * NBP + NBP * H + H * N_out))
    bytes_accessed = int(
        B_pad * (N_in + N_out + NBP) * 4                       # x, out, q
        + (N_in * H + H * NBP + NBP * H + H * N_out) * 2       # bf16 weights
        + (3 * H + NBP + N_out) * 4                            # f32 biases
    )
    cost = pl.CostEstimate(flops=flops,
                           transcendentals=int(B_pad * N_out),  # sigmoid exp
                           bytes_accessed=bytes_accessed)

    out, q = pl.pallas_call(
        _coder_kernel,
        out_shape=(
            jax.ShapeDtypeStruct((B_pad, N_out), jnp.float32),
            jax.ShapeDtypeStruct((B_pad, NBP), jnp.float32),
        ),
        grid=grid,
        in_specs=[
            pl.BlockSpec((TB, N_in), lambda i: (i, 0)),    # x tile
            pl.BlockSpec((N_in, H), lambda i: (0, 0)),     # w1 (VMEM-resident)
            pl.BlockSpec((1, H), lambda i: (0, 0)),        # b1
            pl.BlockSpec((H, NBP), lambda i: (0, 0)),      # w2
            pl.BlockSpec((1, NBP), lambda i: (0, 0)),      # b2
            pl.BlockSpec((NBP, H), lambda i: (0, 0)),      # w3
            pl.BlockSpec((1, H), lambda i: (0, 0)),        # b3
            pl.BlockSpec((H, N_out), lambda i: (0, 0)),    # w4
            pl.BlockSpec((1, N_out), lambda i: (0, 0)),    # b4
        ],
        out_specs=(
            pl.BlockSpec((TB, N_out), lambda i: (i, 0)),
            pl.BlockSpec((TB, NBP), lambda i: (i, 0)),
        ),
        compiler_params=pltpu.CompilerParams(
            dimension_semantics=("parallel",)),
        cost_estimate=cost,
    )(x, prepared["w1"], prepared["b1"], prepared["w2"], prepared["b2"],
      prepared["w3"], prepared["b3"], prepared["w4"], prepared["b4"])

    # Strip batch padding and the lane-padding of the bottleneck output.
    return out[:B], q[:B, :n_bottleneck]


def _ref_forward(x, prepared, n_bottleneck=8):
    """Pure-JAX reference mirroring the kernel's padded bf16-weight / f32-acc math.
    (Padding columns/rows are exact zeros, so this is mathematically identical to
    the unpadded PyTorch forward.)"""
    def lin(a, w, b):
        return jnp.dot(a.astype(jnp.bfloat16), w,
                       preferred_element_type=jnp.float32) + b
    h1 = jax.nn.relu(lin(x, prepared["w1"], prepared["b1"]))
    feat = jax.nn.relu(lin(h1, prepared["w2"], prepared["b2"]))
    q = jnp.round(feat)
    h2 = jax.nn.relu(lin(q, prepared["w3"], prepared["b3"]))
    out = jax.nn.sigmoid(lin(h2, prepared["w4"], prepared["b4"]))
    return out, q[:, :n_bottleneck]


def init_params(key, N_input=784, N_bottleneck=8, N_output=784):
    N2 = 392
    keys = jax.random.split(key, 8)

    def linear(kw, kb, fan_out, fan_in):
        # deterministic Kaiming-uniform-ish init (matches nn.Linear default bounds)
        bound = 1.0 / jnp.sqrt(fan_in)
        w = jax.random.uniform(kw, (fan_out, fan_in), jnp.float32, -bound, bound)
        b = jax.random.uniform(kb, (fan_out,), jnp.float32, -bound, bound)
        return w, b

    w1, b1 = linear(keys[0], keys[1], N2, N_input)
    w2, b2 = linear(keys[2], keys[3], N_bottleneck, N2)
    w3, b3 = linear(keys[4], keys[5], N2, N_bottleneck)
    w4, b4 = linear(keys[6], keys[7], N_output, N2)
    return {"w1": w1, "b1": b1, "w2": w2, "b2": b2,
            "w3": w3, "b3": b3, "w4": w4, "b4": b4}


if __name__ == "__main__":
    key = jax.random.PRNGKey(0)
    k_param, k_x = jax.random.split(key)

    B, N_input, N_bottleneck, N_output = 8, 784, 8, 784
    params = init_params(k_param, N_input, N_bottleneck, N_output)
    prepared = prepare_params(params)
    x = jax.random.uniform(k_x, (B, N_input), jnp.float32)  # MNIST pixels in [0,1)

    out, q = mnist_coder_forward(x, prepared, n_bottleneck=N_bottleneck)
    out = jax.block_until_ready(out)
    q = jax.block_until_ready(q)

    ref_out, ref_q = _ref_forward(x, prepared, N_bottleneck)
    assert out.shape == (B, N_output) and q.shape == (B, N_bottleneck)
    assert jnp.allclose(out, ref_out, atol=2e-3, rtol=2e-3), \
        float(jnp.max(jnp.abs(out - ref_out)))
    assert jnp.allclose(q, ref_q, atol=1e-3), float(jnp.max(jnp.abs(q - ref_q)))

    print("KERNEL_OK")
</pallas_src>

<mosaic_0001>
module attributes {stable_mosaic.version = 11 : i64} {
  func.func @_coder_kernel(%arg0: i32, %arg1: memref<8x784xf32, #tpu.memory_space<vmem>>, %arg2: memref<784x512xbf16, #tpu.memory_space<vmem>>, %arg3: memref<1x512xf32, #tpu.memory_space<vmem>>, %arg4: memref<512x128xbf16, #tpu.memory_space<vmem>>, %arg5: memref<1x128xf32, #tpu.memory_space<vmem>>, %arg6: memref<128x512xbf16, #tpu.memory_space<vmem>>, %arg7: memref<1x512xf32, #tpu.memory_space<vmem>>, %arg8: memref<512x784xbf16, #tpu.memory_space<vmem>>, %arg9: memref<1x784xf32, #tpu.memory_space<vmem>>, %arg10: memref<8x784xf32, #tpu.memory_space<vmem>>, %arg11: memref<8x128xf32, #tpu.memory_space<vmem>>) attributes {dimension_semantics = [#tpu.dimension_semantics<parallel>], iteration_bounds = array<i64: 1>, scalar_prefetch = 0 : i64, scratch_operands = 0 : i64, tpu.core_type = #tpu.core_type<tc>, window_params = [{transform_indices = @transform_0, window_bounds = array<i64: 8, 784>}, {pipeline_mode = #tpu.pipeline_mode<synchronous>, transform_indices = @transform_1, window_bounds = array<i64: 784, 512>}, {pipeline_mode = #tpu.pipeline_mode<synchronous>, transform_indices = @transform_2, window_bounds = array<i64: 1, 512>}, {pipeline_mode = #tpu.pipeline_mode<synchronous>, transform_indices = @transform_3, window_bounds = array<i64: 512, 128>}, {pipeline_mode = #tpu.pipeline_mode<synchronous>, transform_indices = @transform_4, window_bounds = array<i64: 1, 128>}, {pipeline_mode = #tpu.pipeline_mode<synchronous>, transform_indices = @transform_5, window_bounds = array<i64: 128, 512>}, {pipeline_mode = #tpu.pipeline_mode<synchronous>, transform_indices = @transform_6, window_bounds = array<i64: 1, 512>}, {pipeline_mode = #tpu.pipeline_mode<synchronous>, transform_indices = @transform_7, window_bounds = array<i64: 512, 784>}, {pipeline_mode = #tpu.pipeline_mode<synchronous>, transform_indices = @transform_8, window_bounds = array<i64: 1, 784>}, {transform_indices = @transform_9, window_bounds = array<i64: 8, 784>}, {transform_indices = @transform_10, window_bounds = array<i64: 8, 128>}]} {
    %c0 = arith.constant 0 : index
    %c0_0 = arith.constant 0 : index
    %0 = vector.load %arg1[%c0, %c0_0] : memref<8x784xf32, #tpu.memory_space<vmem>>, vector<8x784xf32>
    %1 = arith.truncf %0 : vector<8x784xf32> to vector<8x784xbf16>
    %c0_1 = arith.constant 0 : index
    %c0_2 = arith.constant 0 : index
    %2 = vector.load %arg2[%c0_1, %c0_2] : memref<784x512xbf16, #tpu.memory_space<vmem>>, vector<784x512xbf16>
    %cst = arith.constant dense<0.000000e+00> : vector<8x512xf32>
    %3 = tpu.matmul %1, %2, %cst {dimension_numbers = #tpu.dot_dimension_numbers<[1], [0], [0], [1], [0, 0, 1, 1], [], []>} : vector<8x784xbf16>, vector<784x512xbf16>, vector<8x512xf32> -> vector<8x512xf32>
    %c0_3 = arith.constant 0 : index
    %c0_4 = arith.constant 0 : index
    %4 = vector.load %arg3[%c0_3, %c0_4] : memref<1x512xf32, #tpu.memory_space<vmem>>, vector<1x512xf32>
    %5 = vector.broadcast %4 : vector<1x512xf32> to vector<8x512xf32>
    %6 = arith.addf %3, %5 : vector<8x512xf32>
    %cst_5 = arith.constant 0.000000e+00 : f32
    %7 = vector.broadcast %cst_5 : f32 to vector<8x512xf32>
    %8 = arith.maximumf %6, %7 : vector<8x512xf32>
    %9 = arith.truncf %8 : vector<8x512xf32> to vector<8x512xbf16>
    %c0_6 = arith.constant 0 : index
    %c0_7 = arith.constant 0 : index
    %10 = vector.load %arg4[%c0_6, %c0_7] : memref<512x128xbf16, #tpu.memory_space<vmem>>, vector<512x128xbf16>
    %cst_8 = arith.constant dense<0.000000e+00> : vector<8x128xf32>
    %11 = tpu.matmul %9, %10, %cst_8 {dimension_numbers = #tpu.dot_dimension_numbers<[1], [0], [0], [1], [0, 0, 1, 1], [], []>} : vector<8x512xbf16>, vector<512x128xbf16>, vector<8x128xf32> -> vector<8x128xf32>
    %c0_9 = arith.constant 0 : index
    %c0_10 = arith.constant 0 : index
    %12 = vector.load %arg5[%c0_9, %c0_10] : memref<1x128xf32, #tpu.memory_space<vmem>>, vector<1x128xf32>
    %13 = vector.broadcast %12 : vector<1x128xf32> to vector<8x128xf32>
    %14 = arith.addf %11, %13 : vector<8x128xf32>
    %cst_11 = arith.constant 0.000000e+00 : f32
    %15 = vector.broadcast %cst_11 : f32 to vector<8x128xf32>
    %16 = arith.maximumf %14, %15 : vector<8x128xf32>
    %17 = math.roundeven %16 : vector<8x128xf32>
    %c0_12 = arith.constant 0 : index
    %c0_13 = arith.constant 0 : index
    %18 = vector.load %arg11[%c0_12, %c0_13] : memref<8x128xf32, #tpu.memory_space<vmem>>, vector<8x128xf32>
    tpu.vector_store %arg11[%c0_12, %c0_13], %17 {strides = array<i32>} : memref<8x128xf32, #tpu.memory_space<vmem>>, vector<8x128xf32>,
    %19 = arith.truncf %17 : vector<8x128xf32> to vector<8x128xbf16>
    %c0_14 = arith.constant 0 : index
    %c0_15 = arith.constant 0 : index
    %20 = vector.load %arg6[%c0_14, %c0_15] : memref<128x512xbf16, #tpu.memory_space<vmem>>, vector<128x512xbf16>
    %cst_16 = arith.constant dense<0.000000e+00> : vector<8x512xf32>
    %21 = tpu.matmul %19, %20, %cst_16 {dimension_numbers = #tpu.dot_dimension_numbers<[1], [0], [0], [1], [0, 0, 1, 1], [], []>} : vector<8x128xbf16>, vector<128x512xbf16>, vector<8x512xf32> -> vector<8x512xf32>
    %c0_17 = arith.constant 0 : index
    %c0_18 = arith.constant 0 : index
    %22 = vector.load %arg7[%c0_17, %c0_18] : memref<1x512xf32, #tpu.memory_space<vmem>>, vector<1x512xf32>
    %23 = vector.broadcast %22 : vector<1x512xf32> to vector<8x512xf32>
    %24 = arith.addf %21, %23 : vector<8x512xf32>
    %cst_19 = arith.constant 0.000000e+00 : f32
    %25 = vector.broadcast %cst_19 : f32 to vector<8x512xf32>
    %26 = arith.maximumf %24, %25 : vector<8x512xf32>
    %27 = arith.truncf %26 : vector<8x512xf32> to vector<8x512xbf16>
    %c0_20 = arith.constant 0 : index
    %c0_21 = arith.constant 0 : index
    %28 = vector.load %arg8[%c0_20, %c0_21] : memref<512x784xbf16, #tpu.memory_space<vmem>>, vector<512x784xbf16>
    %cst_22 = arith.constant dense<0.000000e+00> : vector<8x784xf32>
    %29 = tpu.matmul %27, %28, %cst_22 {dimension_numbers = #tpu.dot_dimension_numbers<[1], [0], [0], [1], [0, 0, 1, 1], [], []>} : vector<8x512xbf16>, vector<512x784xbf16>, vector<8x784xf32> -> vector<8x784xf32>
    %c0_23 = arith.constant 0 : index
    %c0_24 = arith.constant 0 : index
    %30 = vector.load %arg9[%c0_23, %c0_24] : memref<1x784xf32, #tpu.memory_space<vmem>>, vector<1x784xf32>
    %31 = vector.broadcast %30 : vector<1x784xf32> to vector<8x784xf32>
    %32 = arith.addf %29, %31 : vector<8x784xf32>
    %33 = arith.negf %32 : vector<8x784xf32>
    %34 = math.exp %33 : vector<8x784xf32>
    %cst_25 = arith.constant 1.000000e+00 : f32
    %35 = vector.broadcast %cst_25 : f32 to vector<8x784xf32>
    %36 = arith.addf %35, %34 : vector<8x784xf32>
    %37 = arith.divf %35, %36 : vector<8x784xf32>
    %c0_26 = arith.constant 0 : index
    %c0_27 = arith.constant 0 : index
    %38 = vector.load %arg10[%c0_26, %c0_27] : memref<8x784xf32, #tpu.memory_space<vmem>>, vector<8x784xf32>
    tpu.vector_store %arg10[%c0_26, %c0_27], %37 {strides = array<i32>} : memref<8x784xf32, #tpu.memory_space<vmem>>, vector<8x784xf32>,
    return
  }
  func.func @transform_0(%arg0: i32) -> (i32, i32) {
    %c0_i32 = arith.constant 0 : i32
    %c0_i32_0 = arith.constant 0 : i32
    return %arg0, %c0_i32 : i32, i32
  }
  func.func @transform_1(%arg0: i32) -> (i32, i32) {
    %c0_i32 = arith.constant 0 : i32
    %c0_i32_0 = arith.constant 0 : i32
    %c0_i32_1 = arith.constant 0 : i32
    return %c0_i32, %c0_i32_0 : i32, i32
  }
  func.func @transform_2(%arg0: i32) -> (i32, i32) {
    %c0_i32 = arith.constant 0 : i32
    %c0_i32_0 = arith.constant 0 : i32
    %c0_i32_1 = arith.constant 0 : i32
    return %c0_i32, %c0_i32_0 : i32, i32
  }
  func.func @transform_3(%arg0: i32) -> (i32, i32) {
    %c0_i32 = arith.constant 0 : i32
    %c0_i32_0 = arith.constant 0 : i32
    %c0_i32_1 = arith.constant 0 : i32
    return %c0_i32, %c0_i32_0 : i32, i32
  }
  func.func @transform_4(%arg0: i32) -> (i32, i32) {
    %c0_i32 = arith.constant 0 : i32
    %c0_i32_0 = arith.constant 0 : i32
    %c0_i32_1 = arith.constant 0 : i32
    return %c0_i32, %c0_i32_0 : i32, i32
  }
  func.func @transform_5(%arg0: i32) -> (i32, i32) {
    %c0_i32 = arith.constant 0 : i32
    %c0_i32_0 = arith.constant 0 : i32
    %c0_i32_1 = arith.constant 0 : i32
    return %c0_i32, %c0_i32_0 : i32, i32
  }
  func.func @transform_6(%arg0: i32) -> (i32, i32) {
    %c0_i32 = arith.constant 0 : i32
    %c0_i32_0 = arith.constant 0 : i32
    %c0_i32_1 = arith.constant 0 : i32
    return %c0_i32, %c0_i32_0 : i32, i32
  }
  func.func @transform_7(%arg0: i32) -> (i32, i32) {
    %c0_i32 = arith.constant 0 : i32
    %c0_i32_0 = arith.constant 0 : i32
    %c0_i32_1 = arith.constant 0 : i32
    return %c0_i32, %c0_i32_0 : i32, i32
  }
  func.func @transform_8(%arg0: i32) -> (i32, i32) {
    %c0_i32 = arith.constant 0 : i32
    %c0_i32_0 = arith.constant 0 : i32
    %c0_i32_1 = arith.constant 0 : i32
    return %c0_i32, %c0_i32_0 : i32, i32
  }
  func.func @transform_9(%arg0: i32) -> (i32, i32) {
    %c0_i32 = arith.constant 0 : i32
    %c0_i32_0 = arith.constant 0 : i32
    return %arg0, %c0_i32 : i32, i32
  }
  func.func @transform_10(%arg0: i32) -> (i32, i32) {
    %c0_i32 = arith.constant 0 : i32
    %c0_i32_0 = arith.constant 0 : i32
    return %arg0, %c0_i32 : i32, i32
  }
}

</mosaic_0001>

<bundles_post_ra>
// kernel: mnist_coder_forward.1
= control target key start
LH: loop header
LB: loop body
LE: loop exit
PB: predicated region body
PF: predicated region fallthrough
CT: control target
= control target key end

     0   :  { %16 = vsyncpa [#allocation3], 0  ;;  %vm1249_vm0 = vcmask 130048   ;;  %s7135_s0 = inlined_call_operand.vmem [shape: f32[8,784], index: 0, kind: input, shape index: {}]   ;;  %s7136_s1 = inlined_call_operand.vmem [shape: bf16[784,512], index: 1, kind: input, shape index: {}]   ;;  %s7137_s2 = inlined_call_operand.vmem [shape: f32[1,512], index: 2, kind: input, shape index: {}]   ;;  %s7138_s3 = inlined_call_operand.vmem [shape: bf16[512,128], index: 3, kind: input, shape index: {}]   ;;  %s7139_s4 = inlined_call_operand.vmem [shape: f32[1,128], index: 4, kind: input, shape index: {}]   ;;  %s7140_s5 = inlined_call_operand.vmem [shape: bf16[128,512], index: 5, kind: input, shape index: {}]   ;;  %s7141_s6 = inlined_call_operand.vmem [shape: f32[1,512], index: 6, kind: input, shape index: {}]   ;;  %s7142_s7 = inlined_call_operand.vmem [shape: bf16[512,784], index: 7, kind: input, shape index: {}]   ;;  %s7143_s8 = inlined_call_operand.vmem [shape: f32[1,784], index: 8, kind: input, shape index: {}]   ;;  %s7144_s9 = inlined_call_operand.hbm [shape: f32[8,784], index: 9, kind: output, shape index: {0}]   ;;  %s7145_s10 = inlined_call_operand.hbm [shape: f32[8,128], index: 10, kind: output, shape index: {1}]  }
   0x1   :  { %v4720_v0 = vld [vmem:[%s7136_s1 + $0x4] ss:$16 sps:$4 sm:$0xff]   ;;  %v4722_v1 = vld [vmem:[%s7136_s1 + $0xc] ss:$16 sps:$4 sm:$0xff]   ;;  %v4724_v2 = vld [vmem:[%s7136_s1] ss:$16 sps:$4 sm:$0xff]  }
   0x2   :  { %1253 = vmatprep.subr.bf16.mxu0 %v4720_v0  ;;  %v4725_v3 = vld [vmem:[%s7136_s1 + $0x8] ss:$16 sps:$4 sm:$0xff]   ;;  %1417 = vmatprep.subr.bf16.mxu1 %v4722_v1  ;;  %v4726_v4 = vld [vmem:[%s7136_s1 + $0x24] ss:$16 sps:$4 sm:$0xff]   ;;  %v4728_v5 = vld [vmem:[%s7136_s1 + $0x2c] ss:$16 sps:$4 sm:$0xff]  }
   0x3   :  { %1254 = vmatpush1.bf16.msra.mxu0 %v4724_v2  ;;  %1418 = vmatpush1.bf16.msra.mxu1 %v4725_v3  ;;  %v4730_v6 = vld [vmem:[%s7136_s1 + $0x20] ss:$16 sps:$4 sm:$0xff]   ;;  %v4731_v7 = vld [vmem:[%s7136_s1 + $0x28] ss:$16 sps:$4 sm:$0xff]   ;;  %v4732_v8 = vld [vmem:[%s7136_s1 + $0x44] ss:$16 sps:$4 sm:$0xff]  }
   0x4   :  { %1255 = vmatprep.subr.bf16.mxu0 %v4726_v4  ;;  %1419 = vmatprep.subr.bf16.mxu1 %v4728_v5  ;;  %v4734_v9 = vld [vmem:[%s7136_s1 + $0x4c] ss:$16 sps:$4 sm:$0xff]   ;;  %v4736_v10 = vld [vmem:[%s7136_s1 + $0x40] ss:$16 sps:$4 sm:$0xff]   ;;  %v4737_v11 = vld [vmem:[%s7136_s1 + $0x48] ss:$16 sps:$4 sm:$0xff]  }
   0x5   :  { %v4738_v12 = vld [vmem:[%s7136_s1 + $0x64] ss:$16 sps:$4 sm:$0xff]   ;;  %v4740_v13 = vld [vmem:[%s7136_s1 + $0x6c] ss:$16 sps:$4 sm:$0xff]   ;;  %v4742_v14 = vld [vmem:[%s7136_s1 + $0x60] ss:$16 sps:$4 sm:$0xff]  }
   0x6   :  { %v4743_v15 = vld [vmem:[%s7136_s1 + $0x68] ss:$16 sps:$4 sm:$0xff]   ;;  %v4744_v16 = vld [vmem:[%s7136_s1 + $0x84] ss:$16 sps:$4 sm:$0xff]   ;;  %v4746_v17 = vld [vmem:[%s7136_s1 + $0x8c] ss:$16 sps:$4 sm:$0xff]  }
   0x7   :  { %1256 = vmatpush1.bf16.msra.mxu0 %v4730_v6  ;;  %1420 = vmatpush1.bf16.msra.mxu1 %v4731_v7  ;;  %v4748_v18 = vld [vmem:[%s7136_s1 + $0x80] ss:$16 sps:$4 sm:$0xff]   ;;  %v4749_v19 = vld [vmem:[%s7136_s1 + $0x88] ss:$16 sps:$4 sm:$0xff]   ;;  %v4750_v20 = vld [vmem:[%s7136_s1 + $0xa4] ss:$16 sps:$4 sm:$0xff]  }
   0x8   :  { %1257 = vmatprep.subr.bf16.mxu0 %v4732_v8  ;;  %1421 = vmatprep.subr.bf16.mxu1 %v4734_v9  ;;  %v4752_v21 = vld [vmem:[%s7136_s1 + $0xac] ss:$16 sps:$4 sm:$0xff]   ;;  %v4754_v22 = vld [vmem:[%s7136_s1 + $0xa0] ss:$16 sps:$4 sm:$0xff]   ;;  %v4755_v23 = vld [vmem:[%s7136_s1 + $0xa8] ss:$16 sps:$4 sm:$0xff]  }
   0x9   :  { %v4756_v24 = vld [vmem:[%s7136_s1 + $0xc4] ss:$16 sps:$4 sm:$0xff]   ;;  %v4758_v25 = vld [vmem:[%s7136_s1 + $0xcc] ss:$16 sps:$4 sm:$0xff]   ;;  %v4760_v26 = vld [vmem:[%s7136_s1 + $0xc0] ss:$16 sps:$4 sm:$0xff]  }
   0xa   :  { %v4761_v27 = vld [vmem:[%s7136_s1 + $0xc8] ss:$16 sps:$4 sm:$0xff]   ;;  %v4762_v28 = vld [vmem:[%s7136_s1 + $0xe4] ss:$16 sps:$4 sm:$0xff]   ;;  %v4764_v29 = vld [vmem:[%s7136_s1 + $0xec] ss:$16 sps:$4 sm:$0xff]  }
   0xb   :  { %1258 = vmatpush1.bf16.msra.mxu0 %v4736_v10  ;;  %1422 = vmatpush1.bf16.msra.mxu1 %v4737_v11  ;;  %v4766_v30 = vld [vmem:[%s7136_s1 + $0xe0] ss:$16 sps:$4 sm:$0xff]   ;;  %v4767_v31 = vld [vmem:[%s7136_s1 + $0xe8] ss:$16 sps:$4 sm:$0xff]   ;;  %v4768_v32 = vld [vmem:[%s7136_s1 + $0x104] ss:$16 sps:$4 sm:$0xff]  }
   0xc   :  { %1259 = vmatprep.subr.bf16.mxu0 %v4738_v12  ;;  %1423 = vmatprep.subr.bf16.mxu1 %v4740_v13  ;;  %v4770_v33 = vld [vmem:[%s7136_s1 + $0x10c] ss:$16 sps:$4 sm:$0xff]   ;;  %v4772_v34 = vld [vmem:[%s7136_s1 + $0x100] ss:$16 sps:$4 sm:$0xff]   ;;  %v4773_v35 = vld [vmem:[%s7136_s1 + $0x108] ss:$16 sps:$4 sm:$0xff]  }
   0xd   :  { %v4774_v36 = vld [vmem:[%s7136_s1 + $0x124] ss:$16 sps:$4 sm:$0xff]   ;;  %v4776_v37 = vld [vmem:[%s7136_s1 + $0x12c] ss:$16 sps:$4 sm:$0xff]   ;;  %v4778_v38 = vld [vmem:[%s7136_s1 + $0x120] ss:$16 sps:$4 sm:$0xff]  }
   0xe   :  { %v4779_v39 = vld [vmem:[%s7136_s1 + $0x128] ss:$16 sps:$4 sm:$0xff]   ;;  %v4780_v40 = vld [vmem:[%s7136_s1 + $0x144] ss:$16 sps:$4 sm:$0xff]   ;;  %v4782_v41 = vld [vmem:[%s7136_s1 + $0x14c] ss:$16 sps:$4 sm:$0xff]  }
   0xf   :  { %1260 = vmatpush1.bf16.msra.mxu0 %v4742_v14  ;;  %1424 = vmatpush1.bf16.msra.mxu1 %v4743_v15  ;;  %v4784_v42 = vld [vmem:[%s7136_s1 + $0x140] ss:$16 sps:$4 sm:$0xff]   ;;  %v4785_v43 = vld [vmem:[%s7136_s1 + $0x148] ss:$16 sps:$4 sm:$0xff]   ;;  %v4786_v44 = vld [vmem:[%s7136_s1 + $0x164] ss:$16 sps:$4 sm:$0xff]  }
  0x10   :  { %1261 = vmatprep.subr.bf16.mxu0 %v4744_v16  ;;  %1425 = vmatprep.subr.bf16.mxu1 %v4746_v17  ;;  %v4788_v45 = vld [vmem:[%s7136_s1 + $0x16c] ss:$16 sps:$4 sm:$0xff]   ;;  %v4790_v47 = vld [vmem:[%s7136_s1 + $0x160] ss:$16 sps:$4 sm:$0xff]   ;;  %v4791_v49 = vld [vmem:[%s7136_s1 + $0x168] ss:$16 sps:$4 sm:$0xff]  }
  0x11   :  { %v38_v46 = vld [vmem:[%s7135_s0 + $0x8] sm:$0xff]  ;;  %v4792_v50 = vld [vmem:[%s7136_s1 + $0x184] ss:$16 sps:$4 sm:$0xff]   ;;  %v4796_v52 = vld [vmem:[%s7136_s1 + $0x180] ss:$16 sps:$4 sm:$0xff]  }
  0x12   :  { %v45_v48 = vpack.c.bf16 %v38_v46, %v38_v46  ;;  %v4794_v51 = vld [vmem:[%s7136_s1 + $0x18c] ss:$16 sps:$4 sm:$0xff]   ;;  %v4797_v53 = vld [vmem:[%s7136_s1 + $0x188] ss:$16 sps:$4 sm:$0xff]   ;;  %v4798_v54 = vld [vmem:[%s7136_s1 + $0x1a4] ss:$16 sps:$4 sm:$0xff]  }
  0x13   :  { %1262 = vmatpush1.bf16.msra.mxu0 %v4748_v18  ;;  %1426 = vmatpush1.bf16.msra.mxu1 %v4749_v19  ;;  %v4800_v55 = vld [vmem:[%s7136_s1 + $0x1ac] ss:$16 sps:$4 sm:$0xff]   ;;  %v4802_v56 = vld [vmem:[%s7136_s1 + $0x1a0] ss:$16 sps:$4 sm:$0xff]   ;;  %v4803_v57 = vld [vmem:[%s7136_s1 + $0x1a8] ss:$16 sps:$4 sm:$0xff]  }
  0x14   :  { %1263 = vmatprep.subr.bf16.mxu0 %v4750_v20  ;;  %1427 = vmatprep.subr.bf16.mxu1 %v4752_v21  ;;  %v4804_v58 = vld [vmem:[%s7136_s1 + $0x1c4] ss:$16 sps:$4 sm:$0xff]   ;;  %v4806_v59 = vld [vmem:[%s7136_s1 + $0x1cc] ss:$16 sps:$4 sm:$0xff]   ;;  %v4808_v60 = vld [vmem:[%s7136_s1 + $0x1c0] ss:$16 sps:$4 sm:$0xff]  }
  0x15   :  { %1285 = vmatprep.mubr.bf16.mxu0 %v45_v48  ;;  %1449 = vmatprep.mubr.bf16.mxu1 %v45_v48  ;;  %v4809_v61 = vld [vmem:[%s7136_s1 + $0x1c8] ss:$16 sps:$4 sm:$0xff]   ;;  %v4810_v62 = vld [vmem:[%s7136_s1 + $0x1e4] ss:$16 sps:$4 sm:$0xff]   ;;  %v4812_v63 = vld [vmem:[%s7136_s1 + $0x1ec] ss:$16 sps:$4 sm:$0xff]  }
  0x16   :  { %v4814_v0 = vld [vmem:[%s7136_s1 + $0x1e0] ss:$16 sps:$4 sm:$0xff]   ;;  %v4815_v1 = vld [vmem:[%s7136_s1 + $0x1e8] ss:$16 sps:$4 sm:$0xff]   ;;  %v4818_v3 = vld [vmem:[%s7136_s1 + $0x204] ss:$16 sps:$4 sm:$0xff]  }
  0x17   :  { %1264 = vmatpush1.bf16.msra.mxu0 %v4754_v22  ;;  %1428 = vmatpush1.bf16.msra.mxu1 %v4755_v23  ;;  %v37_v2 = vld [vmem:[%s7135_s0] sm:$0xff]  ;;  %v4821_v4 = vld [vmem:[%s7136_s1 + $0x20c] ss:$16 sps:$4 sm:$0xff]   ;;  %v4819_v7 = vld [vmem:[%s7136_s1 + $0x208] ss:$16 sps:$4 sm:$0xff]  }
  0x18   :  { %1265 = vmatprep.subr.bf16.mxu0 %v4756_v24  ;;  %1429 = vmatprep.subr.bf16.mxu1 %v4758_v25  ;;  %v44_v5 = vpack.c.bf16 %v37_v2, %v37_v2  ;;  %v4816_v6 = vld [vmem:[%s7136_s1 + $0x200] ss:$16 sps:$4 sm:$0xff]   ;;  %v4824_v8 = vld [vmem:[%s7136_s1 + $0x224] ss:$16 sps:$4 sm:$0xff]   ;;  %v4827_v9 = vld [vmem:[%s7136_s1 + $0x22c] ss:$16 sps:$4 sm:$0xff]  }
  0x19   :  { %v4822_v10 = vld [vmem:[%s7136_s1 + $0x220] ss:$16 sps:$4 sm:$0xff]   ;;  %v4825_v11 = vld [vmem:[%s7136_s1 + $0x228] ss:$16 sps:$4 sm:$0xff]   ;;  %v4830_v12 = vld [vmem:[%s7136_s1 + $0x244] ss:$16 sps:$4 sm:$0xff]  }
  0x1a   :  { %v4833_v13 = vld [vmem:[%s7136_s1 + $0x24c] ss:$16 sps:$4 sm:$0xff]   ;;  %v4828_v14 = vld [vmem:[%s7136_s1 + $0x240] ss:$16 sps:$4 sm:$0xff]   ;;  %v4831_v15 = vld [vmem:[%s7136_s1 + $0x248] ss:$16 sps:$4 sm:$0xff]  }
  0x1b   :  { %1266 = vmatpush1.bf16.msra.mxu0 %v4760_v26  ;;  %1430 = vmatpush1.bf16.msra.mxu1 %v4761_v27  ;;  %v4836_v16 = vld [vmem:[%s7136_s1 + $0x264] ss:$16 sps:$4 sm:$0xff]   ;;  %v4839_v17 = vld [vmem:[%s7136_s1 + $0x26c] ss:$16 sps:$4 sm:$0xff]   ;;  %v4834_v18 = vld [vmem:[%s7136_s1 + $0x260] ss:$16 sps:$4 sm:$0xff]  }
  0x1c   :  { %1267 = vmatprep.subr.bf16.mxu0 %v4762_v28  ;;  %1431 = vmatprep.subr.bf16.mxu1 %v4764_v29  ;;  %v4837_v19 = vld [vmem:[%s7136_s1 + $0x268] ss:$16 sps:$4 sm:$0xff]   ;;  %v4842_v20 = vld [vmem:[%s7136_s1 + $0x284] ss:$16 sps:$4 sm:$0xff]   ;;  %v4845_v21 = vld [vmem:[%s7136_s1 + $0x28c] ss:$16 sps:$4 sm:$0xff]  }
  0x1d   :  { %v4840_v22 = vld [vmem:[%s7136_s1 + $0x280] ss:$16 sps:$4 sm:$0xff]   ;;  %v4843_v23 = vld [vmem:[%s7136_s1 + $0x288] ss:$16 sps:$4 sm:$0xff]   ;;  %v4848_v24 = vld [vmem:[%s7136_s1 + $0x2a4] ss:$16 sps:$4 sm:$0xff]  }
  0x1e   :  { %v4851_v25 = vld [vmem:[%s7136_s1 + $0x2ac] ss:$16 sps:$4 sm:$0xff]   ;;  %v4846_v26 = vld [vmem:[%s7136_s1 + $0x2a0] ss:$16 sps:$4 sm:$0xff]   ;;  %v4849_v27 = vld [vmem:[%s7136_s1 + $0x2a8] ss:$16 sps:$4 sm:$0xff]  }
  0x1f   :  { %1268 = vmatpush1.bf16.msra.mxu0 %v4766_v30  ;;  %1432 = vmatpush1.bf16.msra.mxu1 %v4767_v31  ;;  %v4854_v28 = vld [vmem:[%s7136_s1 + $0x2c4] ss:$16 sps:$4 sm:$0xff]   ;;  %v4857_v29 = vld [vmem:[%s7136_s1 + $0x2cc] ss:$16 sps:$4 sm:$0xff]   ;;  %v4852_v31 = vld [vmem:[%s7136_s1 + $0x2c0] ss:$16 sps:$4 sm:$0xff]  }
  0x20   :  { %1269 = vmatprep.subr.bf16.mxu0 %v4768_v32  ;;  %1433 = vmatprep.subr.bf16.mxu1 %v4770_v33  ;;  %v40_v30 = vld [vmem:[%s7135_s0 + $0x18] sm:$0xff]  ;;  %v4878_v46 = vld [vmem:[%s7136_s1 + $0x344] ss:$16 sps:$4 sm:$0xff]   ;;  %v4876_v48 = vld [vmem:[%s7136_s1 + $0x340] ss:$16 sps:$4 sm:$0xff]  }
  0x21   :  { %v47_v32 = vpack.c.bf16 %v40_v30, %v40_v30  ;;  %v4855_v33 = vld [vmem:[%s7136_s1 + $0x2c8] ss:$16 sps:$4 sm:$0xff]   ;;  %v4908_v2 = vld [vmem:[%s7136_s1 + $0x3e4] ss:$16 sps:$4 sm:$0xff]  }
  0x22   :  { %v4944_v30 = vld [vmem:[%s7136_s1 + $0x4a4] ss:$16 sps:$4 sm:$0xff]  }
  0x23   :  { %1270 = vmatpush1.bf16.msra.mxu0 %v4772_v34  ;;  %1434 = vmatpush1.bf16.msra.mxu1 %v4773_v35  ;;  %v4860_v34 = vld [vmem:[%s7136_s1 + $0x2e4] ss:$16 sps:$4 sm:$0xff]   ;;  %v4863_v35 = vld [vmem:[%s7136_s1 + $0x2ec] ss:$16 sps:$4 sm:$0xff]  }
  0x24   :  { %1271 = vmatprep.subr.bf16.mxu0 %v4774_v36  ;;  %1435 = vmatprep.subr.bf16.mxu1 %v4776_v37  ;;  %v4858_v36 = vld [vmem:[%s7136_s1 + $0x2e0] ss:$16 sps:$4 sm:$0xff]   ;;  %v4861_v37 = vld [vmem:[%s7136_s1 + $0x2e8] ss:$16 sps:$4 sm:$0xff]  }
  0x27   :  { %1272 = vmatpush1.bf16.msra.mxu0 %v4778_v38  ;;  %1436 = vmatpush1.bf16.msra.mxu1 %v4779_v39  ;;  %v4866_v38 = vld [vmem:[%s7136_s1 + $0x304] ss:$16 sps:$4 sm:$0xff]   ;;  %v4869_v39 = vld [vmem:[%s7136_s1 + $0x30c] ss:$16 sps:$4 sm:$0xff]  }
  0x28   :  { %1273 = vmatprep.subr.bf16.mxu0 %v4780_v40  ;;  %1437 = vmatprep.subr.bf16.mxu1 %v4782_v41  ;;  %v4864_v40 = vld [vmem:[%s7136_s1 + $0x300] ss:$16 sps:$4 sm:$0xff]   ;;  %v4867_v41 = vld [vmem:[%s7136_s1 + $0x308] ss:$16 sps:$4 sm:$0xff]  }
  0x2b   :  { %1274 = vmatpush1.bf16.msra.mxu0 %v4784_v42  ;;  %1438 = vmatpush1.bf16.msra.mxu1 %v4785_v43  ;;  %v4872_v42 = vld [vmem:[%s7136_s1 + $0x324] ss:$16 sps:$4 sm:$0xff]   ;;  %v4875_v43 = vld [vmem:[%s7136_s1 + $0x32c] ss:$16 sps:$4 sm:$0xff]  }
  0x2c   :  { %1275 = vmatprep.subr.bf16.mxu0 %v4786_v44  ;;  %1439 = vmatprep.subr.bf16.mxu1 %v4788_v45  ;;  %v4870_v44 = vld [vmem:[%s7136_s1 + $0x320] ss:$16 sps:$4 sm:$0xff]   ;;  %v4873_v45 = vld [vmem:[%s7136_s1 + $0x328] ss:$16 sps:$4 sm:$0xff]  }
  0x2f   :  { %1276 = vmatpush1.bf16.msra.mxu0 %v4790_v47  ;;  %1440 = vmatpush1.bf16.msra.mxu1 %v4791_v49  ;;  %v4881_v47 = vld [vmem:[%s7136_s1 + $0x34c] ss:$16 sps:$4 sm:$0xff]   ;;  %v4879_v49 = vld [vmem:[%s7136_s1 + $0x348] ss:$16 sps:$4 sm:$0xff]  }
  0x30   :  { %1277 = vmatprep.subr.bf16.mxu0 %v4792_v50  ;;  %1441 = vmatprep.subr.bf16.mxu1 %v4794_v51  ;;  %v4884_v50 = vld [vmem:[%s7136_s1 + $0x364] ss:$16 sps:$4 sm:$0xff]   ;;  %v4887_v51 = vld [vmem:[%s7136_s1 + $0x36c] ss:$16 sps:$4 sm:$0xff]  }
  0x33   :  { %1278 = vmatpush1.bf16.msra.mxu0 %v4796_v52  ;;  %1442 = vmatpush1.bf16.msra.mxu1 %v4797_v53  ;;  %v4882_v52 = vld [vmem:[%s7136_s1 + $0x360] ss:$16 sps:$4 sm:$0xff]   ;;  %v4885_v53 = vld [vmem:[%s7136_s1 + $0x368] ss:$16 sps:$4 sm:$0xff]  }
  0x34   :  { %1279 = vmatprep.subr.bf16.mxu0 %v4798_v54  ;;  %1443 = vmatprep.subr.bf16.mxu1 %v4800_v55  ;;  %v4890_v54 = vld [vmem:[%s7136_s1 + $0x384] ss:$16 sps:$4 sm:$0xff]   ;;  %v4893_v55 = vld [vmem:[%s7136_s1 + $0x38c] ss:$16 sps:$4 sm:$0xff]  }
  0x37   :  { %1280 = vmatpush1.bf16.msra.mxu0 %v4802_v56  ;;  %1444 = vmatpush1.bf16.msra.mxu1 %v4803_v57  ;;  %v4888_v56 = vld [vmem:[%s7136_s1 + $0x380] ss:$16 sps:$4 sm:$0xff]   ;;  %v4891_v57 = vld [vmem:[%s7136_s1 + $0x388] ss:$16 sps:$4 sm:$0xff]  }
  0x38   :  { %1281 = vmatprep.subr.bf16.mxu0 %v4804_v58  ;;  %1445 = vmatprep.subr.bf16.mxu1 %v4806_v59  ;;  %v4896_v58 = vld [vmem:[%s7136_s1 + $0x3a4] ss:$16 sps:$4 sm:$0xff]   ;;  %v4899_v59 = vld [vmem:[%s7136_s1 + $0x3ac] ss:$16 sps:$4 sm:$0xff]  }
  0x3b   :  { %1282 = vmatpush1.bf16.msra.mxu0 %v4808_v60  ;;  %1446 = vmatpush1.bf16.msra.mxu1 %v4809_v61  ;;  %v4894_v60 = vld [vmem:[%s7136_s1 + $0x3a0] ss:$16 sps:$4 sm:$0xff]   ;;  %v4897_v61 = vld [vmem:[%s7136_s1 + $0x3a8] ss:$16 sps:$4 sm:$0xff]  }
  0x3c   :  { %1283 = vmatprep.subr.bf16.mxu0 %v4810_v62  ;;  %1447 = vmatprep.subr.bf16.mxu1 %v4812_v63  ;;  %v4902_v62 = vld [vmem:[%s7136_s1 + $0x3c4] ss:$16 sps:$4 sm:$0xff]   ;;  %v4905_v63 = vld [vmem:[%s7136_s1 + $0x3cc] ss:$16 sps:$4 sm:$0xff]  }
  0x3f   :  { %1284 = vmatpush1.bf16.msra.mxu0 %v4814_v0  ;;  %1448 = vmatpush1.bf16.msra.mxu1 %v4815_v1  ;;  %v4900_v0 = vld [vmem:[%s7136_s1 + $0x3c0] ss:$16 sps:$4 sm:$0xff]   ;;  %v4903_v1 = vld [vmem:[%s7136_s1 + $0x3c8] ss:$16 sps:$4 sm:$0xff]  }
  0x40   :  { %1294 = vmatprep.subr.bf16.mxu0 %v4818_v3  ;;  %1458 = vmatprep.subr.bf16.mxu1 %v4821_v4  ;;  %v4911_v3 = vld [vmem:[%s7136_s1 + $0x3ec] ss:$16 sps:$4 sm:$0xff]   ;;  %v4906_v4 = vld [vmem:[%s7136_s1 + $0x3e0] ss:$16 sps:$4 sm:$0xff]  }
  0x42   :  { %1286 = vmatmul.mubr.bf16.vlgmr.msra.gmra.mrb[0].mxu0 %v44_v5  ;;  %1450 = vmatmul.mubr.bf16.vlgmr.msra.gmra.mrb[0].mxu1 %v44_v5  ;;  %v4909_v5 = vld [vmem:[%s7136_s1 + $0x3e8] ss:$16 sps:$4 sm:$0xff]  }
  0x43   :  { %1295 = vmatpush1.bf16.msra.mxu0 %v4816_v6  ;;  %1459 = vmatpush1.bf16.msra.mxu1 %v4819_v7  ;;  %v4914_v6 = vld [vmem:[%s7136_s1 + $0x404] ss:$16 sps:$4 sm:$0xff]  }
  0x44   :  { %1296 = vmatprep.subr.bf16.mxu0 %v4824_v8  ;;  %1460 = vmatprep.subr.bf16.mxu1 %v4827_v9  ;;  %v39_v7 = vld [vmem:[%s7135_s0 + $0x10] sm:$0xff]  ;;  %v4917_v8 = vld [vmem:[%s7136_s1 + $0x40c] ss:$16 sps:$4 sm:$0xff]  }
  0x45   :  { %1326 = vmatprep.mubr.bf16.mxu0 %v47_v32  ;;  %1490 = vmatprep.mubr.bf16.mxu1 %v47_v32  ;;  %v4912_v9 = vld [vmem:[%s7136_s1 + $0x400] ss:$16 sps:$4 sm:$0xff]  }
  0x46   :  { %v4942_v32 = vld [vmem:[%s7136_s1 + $0x4a0] ss:$16 sps:$4 sm:$0xff]  }
  0x47   :  { %1297 = vmatpush1.bf16.msra.mxu0 %v4822_v10  ;;  %1461 = vmatpush1.bf16.msra.mxu1 %v4825_v11  ;;  %v46_v10 = vpack.c.bf16 %v39_v7, %v39_v7  ;;  %v4915_v11 = vld [vmem:[%s7136_s1 + $0x408] ss:$16 sps:$4 sm:$0xff]   ;;  %v5007_v7 = vld [vmem:[%s7136_s1 + $0x5ec] ss:$16 sps:$4 sm:$0xff]  }
  0x48   :  { %1298 = vmatprep.subr.bf16.mxu0 %v4830_v12  ;;  %1462 = vmatprep.subr.bf16.mxu1 %v4833_v13  ;;  %v4920_v12 = vld [vmem:[%s7136_s1 + $0x424] ss:$16 sps:$4 sm:$0xff]   ;;  %v4923_v13 = vld [vmem:[%s7136_s1 + $0x42c] ss:$16 sps:$4 sm:$0xff]  }
  0x4b   :  { %1299 = vmatpush1.bf16.msra.mxu0 %v4828_v14  ;;  %1463 = vmatpush1.bf16.msra.mxu1 %v4831_v15  ;;  %v42_v14 = vld [vmem:[%s7135_s0 + $0x28] sm:$0xff] }
  0x4c   :  { %1300 = vmatprep.subr.bf16.mxu0 %v4836_v16  ;;  %1464 = vmatprep.subr.bf16.mxu1 %v4839_v17  ;;  %v49_v15 = vpack.c.bf16 %v42_v14, %v42_v14  ;;  %v4918_v16 = vld [vmem:[%s7136_s1 + $0x420] ss:$16 sps:$4 sm:$0xff]   ;;  %v4921_v17 = vld [vmem:[%s7136_s1 + $0x428] ss:$16 sps:$4 sm:$0xff]  }
  0x4d   :  { %v5011_v14 = vld [vmem:[%s7136_s1 + $0x608] ss:$16 sps:$4 sm:$0xff]  }
  0x4f   :  { %1301 = vmatpush1.bf16.msra.mxu0 %v4834_v18  ;;  %1465 = vmatpush1.bf16.msra.mxu1 %v4837_v19  ;;  %v4926_v18 = vld [vmem:[%s7136_s1 + $0x444] ss:$16 sps:$4 sm:$0xff]   ;;  %v4929_v19 = vld [vmem:[%s7136_s1 + $0x44c] ss:$16 sps:$4 sm:$0xff]  }
  0x50   :  { %1302 = vmatprep.subr.bf16.mxu0 %v4842_v20  ;;  %1466 = vmatprep.subr.bf16.mxu1 %v4845_v21  ;;  %v4924_v20 = vld [vmem:[%s7136_s1 + $0x440] ss:$16 sps:$4 sm:$0xff]   ;;  %v4927_v21 = vld [vmem:[%s7136_s1 + $0x448] ss:$16 sps:$4 sm:$0xff]  }
  0x53   :  { %1303 = vmatpush1.bf16.msra.mxu0 %v4840_v22  ;;  %1467 = vmatpush1.bf16.msra.mxu1 %v4843_v23  ;;  %v4932_v22 = vld [vmem:[%s7136_s1 + $0x464] ss:$16 sps:$4 sm:$0xff]   ;;  %v4935_v23 = vld [vmem:[%s7136_s1 + $0x46c] ss:$16 sps:$4 sm:$0xff]  }
  0x54   :  { %1304 = vmatprep.subr.bf16.mxu0 %v4848_v24  ;;  %1468 = vmatprep.subr.bf16.mxu1 %v4851_v25  ;;  %v4930_v24 = vld [vmem:[%s7136_s1 + $0x460] ss:$16 sps:$4 sm:$0xff]   ;;  %v4933_v25 = vld [vmem:[%s7136_s1 + $0x468] ss:$16 sps:$4 sm:$0xff]  }
  0x57   :  { %1305 = vmatpush1.bf16.msra.mxu0 %v4846_v26  ;;  %1469 = vmatpush1.bf16.msra.mxu1 %v4849_v27  ;;  %v4938_v26 = vld [vmem:[%s7136_s1 + $0x484] ss:$16 sps:$4 sm:$0xff]   ;;  %v4941_v27 = vld [vmem:[%s7136_s1 + $0x48c] ss:$16 sps:$4 sm:$0xff]  }
  0x58   :  { %1306 = vmatprep.subr.bf16.mxu0 %v4854_v28  ;;  %1470 = vmatprep.subr.bf16.mxu1 %v4857_v29  ;;  %v4936_v28 = vld [vmem:[%s7136_s1 + $0x480] ss:$16 sps:$4 sm:$0xff]   ;;  %v4939_v29 = vld [vmem:[%s7136_s1 + $0x488] ss:$16 sps:$4 sm:$0xff]  }
  0x5b   :  { %1307 = vmatpush1.bf16.msra.mxu0 %v4852_v31  ;;  %1471 = vmatpush1.bf16.msra.mxu1 %v4855_v33  ;;  %v4947_v31 = vld [vmem:[%s7136_s1 + $0x4ac] ss:$16 sps:$4 sm:$0xff]   ;;  %v4945_v33 = vld [vmem:[%s7136_s1 + $0x4a8] ss:$16 sps:$4 sm:$0xff]  }
  0x5c   :  { %1308 = vmatprep.subr.bf16.mxu0 %v4860_v34  ;;  %1472 = vmatprep.subr.bf16.mxu1 %v4863_v35  ;;  %v4950_v34 = vld [vmem:[%s7136_s1 + $0x4c4] ss:$16 sps:$4 sm:$0xff]   ;;  %v4953_v35 = vld [vmem:[%s7136_s1 + $0x4cc] ss:$16 sps:$4 sm:$0xff]  }
  0x5f   :  { %1309 = vmatpush1.bf16.msra.mxu0 %v4858_v36  ;;  %1473 = vmatpush1.bf16.msra.mxu1 %v4861_v37  ;;  %v4948_v36 = vld [vmem:[%s7136_s1 + $0x4c0] ss:$16 sps:$4 sm:$0xff]   ;;  %v4951_v37 = vld [vmem:[%s7136_s1 + $0x4c8] ss:$16 sps:$4 sm:$0xff]  }
  0x60   :  { %1310 = vmatprep.subr.bf16.mxu0 %v4866_v38  ;;  %1474 = vmatprep.subr.bf16.mxu1 %v4869_v39  ;;  %v4956_v38 = vld [vmem:[%s7136_s1 + $0x4e4] ss:$16 sps:$4 sm:$0xff]   ;;  %v4959_v39 = vld [vmem:[%s7136_s1 + $0x4ec] ss:$16 sps:$4 sm:$0xff]  }
  0x63   :  { %1311 = vmatpush1.bf16.msra.mxu0 %v4864_v40  ;;  %1475 = vmatpush1.bf16.msra.mxu1 %v4867_v41  ;;  %v4954_v40 = vld [vmem:[%s7136_s1 + $0x4e0] ss:$16 sps:$4 sm:$0xff]   ;;  %v4957_v41 = vld [vmem:[%s7136_s1 + $0x4e8] ss:$16 sps:$4 sm:$0xff]  }
  0x64   :  { %1312 = vmatprep.subr.bf16.mxu0 %v4872_v42  ;;  %1476 = vmatprep.subr.bf16.mxu1 %v4875_v43  ;;  %v4962_v42 = vld [vmem:[%s7136_s1 + $0x504] ss:$16 sps:$4 sm:$0xff]   ;;  %v4965_v43 = vld [vmem:[%s7136_s1 + $0x50c] ss:$16 sps:$4 sm:$0xff]  }
  0x67   :  { %1313 = vmatpush1.bf16.msra.mxu0 %v4870_v44  ;;  %1477 = vmatpush1.bf16.msra.mxu1 %v4873_v45  ;;  %v4960_v44 = vld [vmem:[%s7136_s1 + $0x500] ss:$16 sps:$4 sm:$0xff]   ;;  %v4963_v45 = vld [vmem:[%s7136_s1 + $0x508] ss:$16 sps:$4 sm:$0xff]  }
  0x68   :  { %1314 = vmatprep.subr.bf16.mxu0 %v4878_v46  ;;  %1478 = vmatprep.subr.bf16.mxu1 %v4881_v47  ;;  %v4968_v46 = vld [vmem:[%s7136_s1 + $0x524] ss:$16 sps:$4 sm:$0xff]   ;;  %v4971_v47 = vld [vmem:[%s7136_s1 + $0x52c] ss:$16 sps:$4 sm:$0xff]  }
  0x6b   :  { %1315 = vmatpush1.bf16.msra.mxu0 %v4876_v48  ;;  %1479 = vmatpush1.bf16.msra.mxu1 %v4879_v49  ;;  %v4966_v48 = vld [vmem:[%s7136_s1 + $0x520] ss:$16 sps:$4 sm:$0xff]   ;;  %v4969_v49 = vld [vmem:[%s7136_s1 + $0x528] ss:$16 sps:$4 sm:$0xff]  }
  0x6c   :  { %1316 = vmatprep.subr.bf16.mxu0 %v4884_v50  ;;  %1480 = vmatprep.subr.bf16.mxu1 %v4887_v51  ;;  %v4974_v50 = vld [vmem:[%s7136_s1 + $0x544] ss:$16 sps:$4 sm:$0xff]   ;;  %v4977_v51 = vld [vmem:[%s7136_s1 + $0x54c] ss:$16 sps:$4 sm:$0xff]  }
  0x6f   :  { %1317 = vmatpush1.bf16.msra.mxu0 %v4882_v52  ;;  %1481 = vmatpush1.bf16.msra.mxu1 %v4885_v53  ;;  %v4972_v52 = vld [vmem:[%s7136_s1 + $0x540] ss:$16 sps:$4 sm:$0xff]   ;;  %v4975_v53 = vld [vmem:[%s7136_s1 + $0x548] ss:$16 sps:$4 sm:$0xff]  }
  0x70   :  { %1318 = vmatprep.subr.bf16.mxu0 %v4890_v54  ;;  %1482 = vmatprep.subr.bf16.mxu1 %v4893_v55  ;;  %v4980_v54 = vld [vmem:[%s7136_s1 + $0x564] ss:$16 sps:$4 sm:$0xff]   ;;  %v4983_v55 = vld [vmem:[%s7136_s1 + $0x56c] ss:$16 sps:$4 sm:$0xff]  }
  0x73   :  { %1319 = vmatpush1.bf16.msra.mxu0 %v4888_v56  ;;  %1483 = vmatpush1.bf16.msra.mxu1 %v4891_v57  ;;  %v4978_v56 = vld [vmem:[%s7136_s1 + $0x560] ss:$16 sps:$4 sm:$0xff]   ;;  %v4981_v57 = vld [vmem:[%s7136_s1 + $0x568] ss:$16 sps:$4 sm:$0xff]  }
  0x74   :  { %1320 = vmatprep.subr.bf16.mxu0 %v4896_v58  ;;  %1484 = vmatprep.subr.bf16.mxu1 %v4899_v59  ;;  %v4986_v58 = vld [vmem:[%s7136_s1 + $0x584] ss:$16 sps:$4 sm:$0xff]   ;;  %v4989_v59 = vld [vmem:[%s7136_s1 + $0x58c] ss:$16 sps:$4 sm:$0xff]  }
  0x77   :  { %1321 = vmatpush1.bf16.msra.mxu0 %v4894_v60  ;;  %1485 = vmatpush1.bf16.msra.mxu1 %v4897_v61  ;;  %v4984_v60 = vld [vmem:[%s7136_s1 + $0x580] ss:$16 sps:$4 sm:$0xff]   ;;  %v4987_v61 = vld [vmem:[%s7136_s1 + $0x588] ss:$16 sps:$4 sm:$0xff]  }
  0x78   :  { %1322 = vmatprep.subr.bf16.mxu0 %v4902_v62  ;;  %1486 = vmatprep.subr.bf16.mxu1 %v4905_v63  ;;  %v4992_v62 = vld [vmem:[%s7136_s1 + $0x5a4] ss:$16 sps:$4 sm:$0xff]   ;;  %v4995_v63 = vld [vmem:[%s7136_s1 + $0x5ac] ss:$16 sps:$4 sm:$0xff]  }
  0x7b   :  { %1323 = vmatpush1.bf16.msra.mxu0 %v4900_v0  ;;  %1487 = vmatpush1.bf16.msra.mxu1 %v4903_v1  ;;  %v4990_v0 = vld [vmem:[%s7136_s1 + $0x5a0] ss:$16 sps:$4 sm:$0xff]   ;;  %v4993_v1 = vld [vmem:[%s7136_s1 + $0x5a8] ss:$16 sps:$4 sm:$0xff]  }
  0x7c   :  { %1324 = vmatprep.subr.bf16.mxu0 %v4908_v2  ;;  %1488 = vmatprep.subr.bf16.mxu1 %v4911_v3  ;;  %v4998_v2 = vld [vmem:[%s7136_s1 + $0x5c4] ss:$16 sps:$4 sm:$0xff]   ;;  %v5001_v3 = vld [vmem:[%s7136_s1 + $0x5cc] ss:$16 sps:$4 sm:$0xff]  }
  0x7f   :  { %1325 = vmatpush1.bf16.msra.mxu0 %v4906_v4  ;;  %1489 = vmatpush1.bf16.msra.mxu1 %v4909_v5  ;;  %v4996_v4 = vld [vmem:[%s7136_s1 + $0x5c0] ss:$16 sps:$4 sm:$0xff]   ;;  %v4999_v5 = vld [vmem:[%s7136_s1 + $0x5c8] ss:$16 sps:$4 sm:$0xff]  }
  0x80   :  { %1335 = vmatprep.subr.bf16.mxu0 %v4914_v6  ;;  %1499 = vmatprep.subr.bf16.mxu1 %v4917_v8  ;;  %v5004_v6 = vld [vmem:[%s7136_s1 + $0x5e4] ss:$16 sps:$4 sm:$0xff]   ;;  %v5002_v8 = vld [vmem:[%s7136_s1 + $0x5e0] ss:$16 sps:$4 sm:$0xff]  }
  0x82   :  { %1327 = vmatmul.mubr.bf16.vlgmr.msra.gmra.mrb[0].mxu0 %v46_v10  ;;  %1491 = vmatmul.mubr.bf16.vlgmr.msra.gmra.mrb[0].mxu1 %v46_v10  ;;  %v41_v10 = vld [vmem:[%s7135_s0 + $0x20] sm:$0xff] }
  0x83   :  { %1336 = vmatpush1.bf16.msra.mxu0 %v4912_v9  ;;  %1500 = vmatpush1.bf16.msra.mxu1 %v4915_v11  ;;  %v5005_v9 = vld [vmem:[%s7136_s1 + $0x5e8] ss:$16 sps:$4 sm:$0xff]   ;;  %v5010_v11 = vld [vmem:[%s7136_s1 + $0x604] ss:$16 sps:$4 sm:$0xff]  }
  0x84   :  { %1337 = vmatprep.subr.bf16.mxu0 %v4920_v12  ;;  %1501 = vmatprep.subr.bf16.mxu1 %v4923_v13  ;;  %v5013_v12 = vld [vmem:[%s7136_s1 + $0x60c] ss:$16 sps:$4 sm:$0xff]   ;;  %v5008_v13 = vld [vmem:[%s7136_s1 + $0x600] ss:$16 sps:$4 sm:$0xff]  }
  0x85   :  { %1367 = vmatprep.mubr.bf16.mxu0 %v49_v15  ;;  %1531 = vmatprep.mubr.bf16.mxu1 %v49_v15  ;;  %v48_v15 = vpack.c.bf16 %v41_v10, %v41_v10 }
  0x87   :  { %1338 = vmatpush1.bf16.msra.mxu0 %v4918_v16  ;;  %1502 = vmatpush1.bf16.msra.mxu1 %v4921_v17  ;;  %v5014_v16 = vld [vmem:[%s7138_s3 + $0x40] sm:$0xff]   ;;  %v5490_v17 = vmov 0  }
  0x88   :  { %1339 = vmatprep.subr.bf16.mxu0 %v4926_v18  ;;  %1503 = vmatprep.subr.bf16.mxu1 %v4929_v19  ;;  %v43_v18 = vld [vmem:[%s7135_s0 + $0x30] sm:$0xff]  ;;  %v5015_v19 = vld [vmem:[%s7138_s3] sm:$0xff]  }
  0x8b   :  { %1340 = vmatpush1.bf16.msra.mxu0 %v4924_v20  ;;  %1504 = vmatpush1.bf16.msra.mxu1 %v4927_v21  ;;  %v50_v20 = vpack.c.bf16 %v43_v18, %v43_v18  ;;  %v5016_v21 = vld [vmem:[%s7138_s3 + $0x48] sm:$0xff]  }
  0x8c   :  { %1341 = vmatprep.subr.bf16.mxu0 %v4932_v22  ;;  %1505 = vmatprep.subr.bf16.mxu1 %v4935_v23  ;;  %v5017_v22 = vld [vmem:[%s7138_s3 + $0x8] sm:$0xff]   ;;  %v5018_v23 = vld [vmem:[%s7138_s3 + $0x50] sm:$0xff]  }
  0x8f   :  { %1342 = vmatpush1.bf16.msra.mxu0 %v4930_v24  ;;  %1506 = vmatpush1.bf16.msra.mxu1 %v4933_v25  ;;  %v5019_v24 = vld [vmem:[%s7138_s3 + $0x10] sm:$0xff]   ;;  %v5020_v25 = vld [vmem:[%s7138_s3 + $0x58] sm:$0xff]  }
  0x90   :  { %1343 = vmatprep.subr.bf16.mxu0 %v4938_v26  ;;  %1507 = vmatprep.subr.bf16.mxu1 %v4941_v27  ;;  %v5021_v26 = vld [vmem:[%s7138_s3 + $0x18] sm:$0xff]   ;;  %v5022_v27 = vld [vmem:[%s7138_s3 + $0x60] sm:$0xff]  }
  0x93   :  { %1344 = vmatpush1.bf16.msra.mxu0 %v4936_v28  ;;  %1508 = vmatpush1.bf16.msra.mxu1 %v4939_v29  ;;  %v5023_v28 = vld [vmem:[%s7138_s3 + $0x20] sm:$0xff]   ;;  %v5024_v29 = vld [vmem:[%s7138_s3 + $0x68] sm:$0xff]  }
  0x94   :  { %1345 = vmatprep.subr.bf16.mxu0 %v4944_v30  ;;  %1509 = vmatprep.subr.bf16.mxu1 %v4947_v31  ;;  %v5025_v30 = vld [vmem:[%s7138_s3 + $0x28] sm:$0xff]  }
  0x97   :  { %1346 = vmatpush1.bf16.msra.mxu0 %v4942_v32  ;;  %1510 = vmatpush1.bf16.msra.mxu1 %v4945_v33 }
  0x98   :  { %1347 = vmatprep.subr.bf16.mxu0 %v4950_v34  ;;  %1511 = vmatprep.subr.bf16.mxu1 %v4953_v35 }
  0x9b   :  { %1348 = vmatpush1.bf16.msra.mxu0 %v4948_v36  ;;  %1512 = vmatpush1.bf16.msra.mxu1 %v4951_v37 }
  0x9c   :  { %1349 = vmatprep.subr.bf16.mxu0 %v4956_v38  ;;  %1513 = vmatprep.subr.bf16.mxu1 %v4959_v39 }
  0x9f   :  { %1350 = vmatpush1.bf16.msra.mxu0 %v4954_v40  ;;  %1514 = vmatpush1.bf16.msra.mxu1 %v4957_v41 }
  0xa0   :  { %1351 = vmatprep.subr.bf16.mxu0 %v4962_v42  ;;  %1515 = vmatprep.subr.bf16.mxu1 %v4965_v43 }
  0xa3   :  { %1352 = vmatpush1.bf16.msra.mxu0 %v4960_v44  ;;  %1516 = vmatpush1.bf16.msra.mxu1 %v4963_v45 }
  0xa4   :  { %1353 = vmatprep.subr.bf16.mxu0 %v4968_v46  ;;  %1517 = vmatprep.subr.bf16.mxu1 %v4971_v47 }
  0xa7   :  { %1354 = vmatpush1.bf16.msra.mxu0 %v4966_v48  ;;  %1518 = vmatpush1.bf16.msra.mxu1 %v4969_v49 }
  0xa8   :  { %1355 = vmatprep.subr.bf16.mxu0 %v4974_v50  ;;  %1519 = vmatprep.subr.bf16.mxu1 %v4977_v51 }
  0xab   :  { %1356 = vmatpush1.bf16.msra.mxu0 %v4972_v52  ;;  %1520 = vmatpush1.bf16.msra.mxu1 %v4975_v53 }
  0xac   :  { %1357 = vmatprep.subr.bf16.mxu0 %v4980_v54  ;;  %1521 = vmatprep.subr.bf16.mxu1 %v4983_v55 }
  0xaf   :  { %1358 = vmatpush1.bf16.msra.mxu0 %v4978_v56  ;;  %1522 = vmatpush1.bf16.msra.mxu1 %v4981_v57 }
  0xb0   :  { %1359 = vmatprep.subr.bf16.mxu0 %v4986_v58  ;;  %1523 = vmatprep.subr.bf16.mxu1 %v4989_v59 }
  0xb3   :  { %1360 = vmatpush1.bf16.msra.mxu0 %v4984_v60  ;;  %1524 = vmatpush1.bf16.msra.mxu1 %v4987_v61 }
  0xb4   :  { %1361 = vmatprep.subr.bf16.mxu0 %v4992_v62  ;;  %1525 = vmatprep.subr.bf16.mxu1 %v4995_v63 }
  0xb7   :  { %1362 = vmatpush1.bf16.msra.mxu0 %v4990_v0  ;;  %1526 = vmatpush1.bf16.msra.mxu1 %v4993_v1 }
  0xb8   :  { %1363 = vmatprep.subr.bf16.mxu0 %v4998_v2  ;;  %1527 = vmatprep.subr.bf16.mxu1 %v5001_v3 }
  0xbb   :  { %1364 = vmatpush1.bf16.msra.mxu0 %v4996_v4  ;;  %1528 = vmatpush1.bf16.msra.mxu1 %v4999_v5 }
  0xbc   :  { %1365 = vmatprep.subr.bf16.mxu0 %v5004_v6  ;;  %1529 = vmatprep.subr.bf16.mxu1 %v5007_v7 }
  0xbf   :  { %1366 = vmatpush1.bf16.msra.mxu0 %v5002_v8  ;;  %1530 = vmatpush1.bf16.msra.mxu1 %v5005_v9 }
  0xc0   :  { %1376 = vmatprep.subr.bf16.mxu0 %v5010_v11  ;;  %1540 = vmatprep.subr.bf16.mxu1 %v5013_v12 }
  0xc2   :  { %1368 = vmatmul.mubr.bf16.vlgmr.msra.gmra.mrb[0].mxu0 %v48_v15  ;;  %1532 = vmatmul.mubr.bf16.vlgmr.msra.gmra.mrb[0].mxu1 %v48_v15 }
  0xc3   :  { %1377 = vmatpush1.bf16.msra.mxu0 %v5008_v13  ;;  %1541 = vmatpush1.bf16.msra.mxu1 %v5011_v14 }
  0xc4   :  { %1408 = vmatprep.mubr.bf16.mxu0 %v5490_v17  ;;  %1572 = vmatprep.mubr.bf16.mxu1 %v5490_v17 }
  0xc5   :  { %4582 = vmatprep.subr.bf16.mxu1 %v5014_v16 }
  0xce   :  { %4284 = vmatmul.mubr.msk.bf16.vlgmr.msra.gmra.mrb[0].mxu0 %vm1249_vm0, %v50_v20  ;;  %4285 = vmatmul.mubr.msk.bf16.vlgmr.msra.gmra.mrb[0].mxu1 %vm1249_vm0, %v50_v20 }
  0xcf   :  { %4583 = vmatpush3.bf16.msra.mxu1 %v5015_v19  ;;  %2182 = vmatprep.mubr.bf16.mxu0 %v5490_v17 }
  0xd0   :  { %4584 = vmatprep.subr.bf16.mxu1 %v5016_v21 }
  0xd3   :  { %4585 = vmatpush3.bf16.msra.mxu1 %v5017_v22 }
  0xd4   :  { %4586 = vmatprep.subr.bf16.mxu1 %v5018_v23 }
  0xd7   :  { %4587 = vmatpush3.bf16.msra.mxu1 %v5019_v24 }
  0xd8   :  { %4588 = vmatprep.subr.bf16.mxu1 %v5020_v25 }
  0xdb   :  { %4589 = vmatpush3.bf16.msra.mxu1 %v5021_v26 }
  0xdc   :  { %4590 = vmatprep.subr.bf16.mxu1 %v5022_v27 }
  0xdf   :  { %4591 = vmatpush3.bf16.msra.mxu1 %v5023_v28 }
  0xe0   :  { %4592 = vmatprep.subr.bf16.mxu1 %v5024_v29 }
  0xe3   :  { %4593 = vmatpush3.bf16.msra.mxu1 %v5025_v30 }
  0xe4   :  { %17 = vsyncpa [#allocation5], 0  ;;  %v5026_v31 = vld [vmem:[%s7138_s3 + $0x70] sm:$0xff]   ;;  %v5028_v33 = vld [vmem:[%s7138_s3 + $0x78] sm:$0xff]   ;;  %v249_v36 = vlaneseq }
  0xe5   :  { %v5027_v32 = vld [vmem:[%s7138_s3 + $0x30] sm:$0xff]   ;;  %4594 = vmatprep.subr.bf16.mxu1 %v5026_v31  ;;  %v5029_v34 = vld [vmem:[%s7138_s3 + $0x38] sm:$0xff]   ;;  %v5030_v35 = vld [vmem:[%s7138_s3 + $0xc0] sm:$0xff]  }
  0xe6   :  { %v6213_v37 = vshrl.u32 %v249_v36, 7  ;;  %v247_v39 = vld [vmem:[%s7137_s2] sm:$0xf]  ;;  %v5032_v62 = vld [vmem:[%s7138_s3 + $0xc8] sm:$0xff]   ;;  %v5034_v1 = vld [vmem:[%s7138_s3 + $0xd0] sm:$0xff]  }
  0xe7   :  { %4595 = vmatpush3.bf16.msra.mxu1 %v5027_v32  ;;  %v5031_v60 = vld [vmem:[%s7138_s3 + $0x80] sm:$0xff]   ;;  %v5033_v0 = vld [vmem:[%s7138_s3 + $0x88] sm:$0xff]   ;;  %v5035_v2 = vld [vmem:[%s7138_s3 + $0x90] sm:$0xff]  }
  0xe8   :  { %4596 = vmatprep.subr.bf16.mxu1 %v5028_v33  ;;  %v6216_v38 = vsub.s32 0, %v6213_v37  ;;  %v6222_v40 = vsub.s32 1, %v6213_v37  ;;  %v6225_v41 = vsub.s32 3, %v6213_v37  ;;  %v5036_v3 = vld [vmem:[%s7138_s3 + $0xd8] sm:$0xff]   ;;  %v5038_v5 = vld [vmem:[%s7138_s3 + $0xe0] sm:$0xff]   ;;  %v6258_v7 = vsub.s32 2, %v6213_v37 }
  0xe9   :  { %v5037_v4 = vld [vmem:[%s7138_s3 + $0x98] sm:$0xff]   ;;  %v5039_v6 = vld [vmem:[%s7138_s3 + $0xa0] sm:$0xff]   ;;  %v5040_v8 = vld [vmem:[%s7138_s3 + $0xe8] sm:$0xff]  }
  0xea   :  { %v252_v42 = vrot.slane %v247_v39, %v6216_v38  ;;  %v256_v43 = vrot.slane %v247_v39, %v6222_v40  ;;  %v264_v44 = vrot.slane %v247_v39, %v6225_v41  ;;  %v5041_v9 = vld [vmem:[%s7138_s3 + $0xa8] sm:$0xff]   ;;  %v260_v10 = vrot.slane %v247_v39, %v6258_v7  ;;  %v5042_v11 = vld [vmem:[%s7138_s3 + $0xf0] sm:$0xff]   ;;  %v5044_v14 = vld [vmem:[%s7138_s3 + $0xf8] sm:$0xff]  }
  0xeb   :  { %4597 = vmatpush3.bf16.msra.mxu1 %v5029_v34  ;;  %v5043_v12 = vld [vmem:[%s7138_s3 + $0xb0] sm:$0xff]   ;;  %v5045_v15 = vld [vmem:[%s7138_s3 + $0xb8] sm:$0xff]  }
  0xec   :  { %4604 = vmatprep.subr.bf16.mxu1 %v5030_v35  ;;  %v5046_v19 = vld [vmem:[%s7140_s5] ss:$16 sps:$4 sm:$0xff]   ;;  %v5048_v20 = vld [vmem:[%s7140_s5 + $0x4] ss:$16 sps:$4 sm:$0xff]   ;;  %v5049_v21 = vld [vmem:[%s7140_s5 + $0x8] ss:$16 sps:$4 sm:$0xff]  }
  0xed   :  { %v5051_v22 = vld [vmem:[%s7140_s5 + $0xc] ss:$16 sps:$4 sm:$0xff]   ;;  %2150 = vmatprep.subr.bf16.mxu0 %v5048_v20  ;;  %v5052_v24 = vld [vmem:[%s7140_s5 + $0x20] ss:$16 sps:$4 sm:$0xff]   ;;  %v5055_v25 = vld [vmem:[%s7140_s5 + $0x28] ss:$16 sps:$4 sm:$0xff]  }
  0xee   :  { %v5057_v23 = vld [vmem:[%s7140_s5 + $0x2c] ss:$16 sps:$4 sm:$0xff]   ;;  %2151 = vmatpush1.bf16.msra.mxu0 %v5046_v19  ;;  %v5060_v26 = vld [vmem:[%s7140_s5 + $0x44] ss:$16 sps:$4 sm:$0xff]   ;;  %v5058_v28 = vld [vmem:[%s7140_s5 + $0x40] ss:$16 sps:$4 sm:$0xff]  }
  0xef   :  { %v5063_v27 = vld [vmem:[%s7140_s5 + $0x4c] ss:$16 sps:$4 sm:$0xff]   ;;  %v5061_v29 = vld [vmem:[%s7140_s5 + $0x48] ss:$16 sps:$4 sm:$0xff]   ;;  %v5066_v30 = vld [vmem:[%s7140_s5 + $0x64] ss:$16 sps:$4 sm:$0xff]  }
  0xf0   :  { %v5069_v31 = vld [vmem:[%s7140_s5 + $0x6c] ss:$16 sps:$4 sm:$0xff]   ;;  %v5064_v32 = vld [vmem:[%s7140_s5 + $0x60] ss:$16 sps:$4 sm:$0xff]   ;;  %v5067_v33 = vld [vmem:[%s7140_s5 + $0x68] ss:$16 sps:$4 sm:$0xff]  }
  0xf1   :  { %v5072_v34 = vld [vmem:[%s7140_s5 + $0x84] ss:$16 sps:$4 sm:$0xff]   ;;  %v5075_v35 = vld [vmem:[%s7140_s5 + $0x8c] ss:$16 sps:$4 sm:$0xff]   ;;  %v5070_v36 = vld [vmem:[%s7140_s5 + $0x80] ss:$16 sps:$4 sm:$0xff]  }
  0xf2   :  { %v5073_v39 = vld [vmem:[%s7140_s5 + $0x88] ss:$16 sps:$4 sm:$0xff]  }
  0xf3   :  { %v5109_v19 = vld [vmem:[%s7142_s7 + $0x78] ss:$28 sps:$4 sm:$0xff]   ;;  %v5114_v20 = vld [vmem:[%s7142_s7 + $0xac] ss:$28 sps:$4 sm:$0xff]  }
 0x1a1   :  { %v1410_v45 = vpop.f32.mrb[0].mxu0  ;;  %v1574_v46 = vpop.f32.mrb[0].mxu1 }
 0x1a2   :  { %v4670_v47 = vadd.f32 %v1410_v45, %v252_v42  ;;  %v1412_v48 = vpop.f32.mrb[1].mxu0  ;;  %v1576_v49 = vpop.f32.mrb[1].mxu1  ;;  %v4672_v13 = vadd.f32 %v1574_v46, %v260_v10  ;;  %v5078_v42 = vld [vmem:[%s7140_s5 + $0xa4] ss:$16 sps:$4 sm:$0xff]   ;;  %v5079_v45 = vld [vmem:[%s7140_s5 + $0xa8] ss:$16 sps:$4 sm:$0xff]  }
 0x1a3   :  { %v4671_v50 = vadd.f32 %v1412_v48, %v256_v43  ;;  %v4673_v51 = vadd.f32 %v1576_v49, %v264_v44  ;;  %v1414_v52 = vpop.f32.mrb[2].mxu0  ;;  %v1578_v53 = vpop.f32.mrb[2].mxu1  ;;  %v5081_v43 = vld [vmem:[%s7140_s5 + $0xac] ss:$16 sps:$4 sm:$0xff]   ;;  %v5076_v44 = vld [vmem:[%s7140_s5 + $0xa0] ss:$16 sps:$4 sm:$0xff]  }
 0x1a4   :  { %v1581_v54 = vmax.f32 %v4670_v47, 0.0  ;;  %v1415_v55 = vpop.f32.mrb[3].mxu0  ;;  %v1579_v56 = vpop.f32.mrb[3].mxu1  ;;  %v1583_v16 = vmax.f32 %v4672_v13, 0.0  ;;  %v5084_v46 = vld [vmem:[%s7140_s5 + $0xc4] ss:$16 sps:$4 sm:$0xff]  }
 0x1a5   :  { %v1582_v57 = vmax.f32 %v4671_v50, 0.0  ;;  %v1584_v58 = vmax.f32 %v4673_v51, 0.0  ;;  %v5087_v47 = vld [vmem:[%s7140_s5 + $0xcc] ss:$16 sps:$4 sm:$0xff]   ;;  %v5082_v48 = vld [vmem:[%s7140_s5 + $0xc0] ss:$16 sps:$4 sm:$0xff]  }
 0x1a6   :  { %v1585_v61 = vpack.c.bf16 %v1581_v54, %v1581_v54  ;;  %v1587_v18 = vpack.c.bf16 %v1583_v16, %v1583_v16  ;;  %v5085_v49 = vld [vmem:[%s7140_s5 + $0xc8] ss:$16 sps:$4 sm:$0xff]   ;;  %v5090_v50 = vld [vmem:[%s7140_s5 + $0xe4] ss:$16 sps:$4 sm:$0xff]   ;;  %v5093_v51 = vld [vmem:[%s7140_s5 + $0xec] ss:$16 sps:$4 sm:$0xff]  }
 0x1a7   :  { %v1586_v59 = vpack.c.bf16 %v1582_v57, %v1582_v57  ;;  %v1588_v63 = vpack.c.bf16 %v1584_v58, %v1584_v58  ;;  %v5088_v52 = vld [vmem:[%s7140_s5 + $0xe0] ss:$16 sps:$4 sm:$0xff]   ;;  %v5091_v53 = vld [vmem:[%s7140_s5 + $0xe8] ss:$16 sps:$4 sm:$0xff]  }
 0x1a8   :  { %v5096_v54 = vld [vmem:[%s7142_s7 + $0x4] ss:$28 sps:$4 sm:$0xff]   ;;  %v5099_v55 = vld [vmem:[%s7142_s7 + $0xc] ss:$28 sps:$4 sm:$0xff]   ;;  %v5100_v13 = vld [vmem:[%s7142_s7 + $0x38] ss:$28 sps:$4 sm:$0xff]  }
 0x1a9   :  { %1884 = vmatprep.mubr.bf16.mxu1 %v1586_v59  ;;  %v5111_v16 = vld [vmem:[%s7142_s7 + $0x7c] ss:$28 sps:$4 sm:$0xff]  }
 0x1aa   :  { %1885 = vmatmul.mubr.bf16.vlgmr.msra.gmra.mrb[4].mxu1 %v1585_v61  ;;  %v4286_v61 = vld [vmem:[%s7139_s4] ss:$0 sm:$0xff] }
 0x1ab   :  { %4605 = vmatpush3.bf16.msra.mxu1 %v5031_v60  ;;  %1924 = vmatprep.mubr.bf16.mxu1 %v1588_v63 }
 0x1ac   :  { %4606 = vmatprep.subr.bf16.mxu1 %v5032_v62 }
 0x1af   :  { %4607 = vmatpush3.bf16.msra.mxu1 %v5033_v0 }
 0x1b0   :  { %4608 = vmatprep.subr.bf16.mxu1 %v5034_v1 }
 0x1b3   :  { %4609 = vmatpush3.bf16.msra.mxu1 %v5035_v2 }
 0x1b4   :  { %4610 = vmatprep.subr.bf16.mxu1 %v5036_v3 }
 0x1b7   :  { %4611 = vmatpush3.bf16.msra.mxu1 %v5037_v4 }
 0x1b8   :  { %4612 = vmatprep.subr.bf16.mxu1 %v5038_v5 }
 0x1bb   :  { %4613 = vmatpush3.bf16.msra.mxu1 %v5039_v6 }
 0x1bc   :  { %4614 = vmatprep.subr.bf16.mxu1 %v5040_v8  ;;  %v5094_v8 = vld [vmem:[%s7142_s7] ss:$28 sps:$4 sm:$0xff]  }
 0x1bf   :  { %4615 = vmatpush3.bf16.msra.mxu1 %v5041_v9  ;;  %v5097_v9 = vld [vmem:[%s7142_s7 + $0x8] ss:$28 sps:$4 sm:$0xff]  }
 0x1c0   :  { %4616 = vmatprep.subr.bf16.mxu1 %v5042_v11  ;;  %v5102_v11 = vld [vmem:[%s7142_s7 + $0x3c] ss:$28 sps:$4 sm:$0xff]  }
 0x1c3   :  { %4617 = vmatpush3.bf16.msra.mxu1 %v5043_v12  ;;  %v5105_v12 = vld [vmem:[%s7142_s7 + $0x44] ss:$28 sps:$4 sm:$0xff]  }
 0x1c4   :  { %4618 = vmatprep.subr.bf16.mxu1 %v5044_v14  ;;  %v5103_v14 = vld [vmem:[%s7142_s7 + $0x40] ss:$28 sps:$4 sm:$0xff]  }
 0x1c7   :  { %4619 = vmatpush3.bf16.msra.mxu1 %v5045_v15  ;;  %v5108_v15 = vld [vmem:[%s7142_s7 + $0x74] ss:$28 sps:$4 sm:$0xff]  }
 0x1c8   :  { %2191 = vmatprep.subr.bf16.mxu1 %v5051_v22  ;;  %v5112_v22 = vld [vmem:[%s7142_s7 + $0xa8] ss:$28 sps:$4 sm:$0xff]  }
 0x1ca   :  { %1925 = vmatmul.mubr.bf16.vlgmr.msra.gmra.mrb[8].mxu1 %v1587_v18  ;;  %v5106_v18 = vld [vmem:[%s7142_s7 + $0x70] ss:$28 sps:$4 sm:$0xff]  }
 0x1cb   :  { %2223 = vmatprep.mubr.bf16.mxu1 %v5490_v17  ;;  %v5054_v17 = vld [vmem:[%s7140_s5 + $0x24] ss:$16 sps:$4 sm:$0xff]   ;;  %2192 = vmatpush1.bf16.msra.mxu1 %v5049_v21 }
 0x1cc   :  { %2152 = vmatprep.subr.bf16.mxu0 %v5054_v17  ;;  %2193 = vmatprep.subr.bf16.mxu1 %v5057_v23  ;;  %v5117_v21 = vld [vmem:[%s7142_s7 + $0xb4] ss:$28 sps:$4 sm:$0xff]   ;;  %v5120_v23 = vld [vmem:[%s7142_s7 + $0xe4] ss:$28 sps:$4 sm:$0xff]  }
 0x1cd   :  { %2153 = vmatpush1.bf16.msra.mxu0 %v5052_v24  ;;  %v5115_v17 = vld [vmem:[%s7142_s7 + $0xb0] ss:$28 sps:$4 sm:$0xff]  }
 0x1ce   :  { %2154 = vmatprep.subr.bf16.mxu0 %v5060_v26  ;;  %v5123_v24 = vld [vmem:[%s7142_s7 + $0xec] ss:$28 sps:$4 sm:$0xff]  }
 0x1cf   :  { %2194 = vmatpush1.bf16.msra.mxu1 %v5055_v25  ;;  %v5118_v25 = vld [vmem:[%s7142_s7 + $0xe0] ss:$28 sps:$4 sm:$0xff]   ;;  %v5121_v26 = vld [vmem:[%s7142_s7 + $0xe8] ss:$28 sps:$4 sm:$0xff]  }
 0x1d0   :  { %2195 = vmatprep.subr.bf16.mxu1 %v5063_v27  ;;  %v5126_v27 = vld [vmem:[%s7142_s7 + $0x11c] ss:$28 sps:$4 sm:$0xff]  }
 0x1d1   :  { %2155 = vmatpush1.bf16.msra.mxu0 %v5058_v28  ;;  %v5129_v28 = vld [vmem:[%s7142_s7 + $0x124] ss:$28 sps:$4 sm:$0xff]  }
 0x1d2   :  { %2156 = vmatprep.subr.bf16.mxu0 %v5066_v30  ;;  %v5127_v30 = vld [vmem:[%s7142_s7 + $0x120] ss:$28 sps:$4 sm:$0xff]  }
 0x1d3   :  { %2196 = vmatpush1.bf16.msra.mxu1 %v5061_v29  ;;  %v5124_v29 = vld [vmem:[%s7142_s7 + $0x118] ss:$28 sps:$4 sm:$0xff]  }
 0x1d4   :  { %2197 = vmatprep.subr.bf16.mxu1 %v5069_v31  ;;  %v5132_v31 = vld [vmem:[%s7142_s7 + $0x154] ss:$28 sps:$4 sm:$0xff]  }
 0x1d5   :  { %2157 = vmatpush1.bf16.msra.mxu0 %v5064_v32  ;;  %v5135_v32 = vld [vmem:[%s7142_s7 + $0x15c] ss:$28 sps:$4 sm:$0xff]  }
 0x1d6   :  { %2158 = vmatprep.subr.bf16.mxu0 %v5072_v34  ;;  %v5133_v34 = vld [vmem:[%s7142_s7 + $0x158] ss:$28 sps:$4 sm:$0xff]  }
 0x1d7   :  { %2198 = vmatpush1.bf16.msra.mxu1 %v5067_v33  ;;  %v5130_v33 = vld [vmem:[%s7142_s7 + $0x150] ss:$28 sps:$4 sm:$0xff]  }
 0x1d8   :  { %2199 = vmatprep.subr.bf16.mxu1 %v5075_v35  ;;  %v5138_v35 = vld [vmem:[%s7142_s7 + $0x18c] ss:$28 sps:$4 sm:$0xff]  }
 0x1d9   :  { %2159 = vmatpush1.bf16.msra.mxu0 %v5070_v36  ;;  %v5141_v36 = vld [vmem:[%s7142_s7 + $0x194] ss:$28 sps:$4 sm:$0xff]  }
 0x1da   :  { %2160 = vmatprep.subr.bf16.mxu0 %v5078_v42  ;;  %v5139_v42 = vld [vmem:[%s7142_s7 + $0x190] ss:$28 sps:$4 sm:$0xff]  }
 0x1db   :  { %2200 = vmatpush1.bf16.msra.mxu1 %v5073_v39  ;;  %v5136_v39 = vld [vmem:[%s7142_s7 + $0x188] ss:$28 sps:$4 sm:$0xff]  }
 0x1dc   :  { %2201 = vmatprep.subr.bf16.mxu1 %v5081_v43  ;;  %v5144_v43 = vld [vmem:[%s7142_s7 + $0x1c4] ss:$28 sps:$4 sm:$0xff]  }
 0x1dd   :  { %2161 = vmatpush1.bf16.msra.mxu0 %v5076_v44  ;;  %v5147_v44 = vld [vmem:[%s7142_s7 + $0x1cc] ss:$28 sps:$4 sm:$0xff]  }
 0x1de   :  { %2162 = vmatprep.subr.bf16.mxu0 %v5084_v46  ;;  %v5145_v46 = vld [vmem:[%s7142_s7 + $0x1c8] ss:$28 sps:$4 sm:$0xff]  }
 0x1df   :  { %2202 = vmatpush1.bf16.msra.mxu1 %v5079_v45  ;;  %v5142_v45 = vld [vmem:[%s7142_s7 + $0x1c0] ss:$28 sps:$4 sm:$0xff]  }
 0x1e0   :  { %2203 = vmatprep.subr.bf16.mxu1 %v5087_v47  ;;  %v5150_v47 = vld [vmem:[%s7142_s7 + $0x1fc] ss:$28 sps:$4 sm:$0xff]  }
 0x1e1   :  { %2163 = vmatpush1.bf16.msra.mxu0 %v5082_v48  ;;  %v5153_v48 = vld [vmem:[%s7142_s7 + $0x204] ss:$28 sps:$4 sm:$0xff]  }
 0x1e2   :  { %2164 = vmatprep.subr.bf16.mxu0 %v5090_v50  ;;  %v5151_v50 = vld [vmem:[%s7142_s7 + $0x200] ss:$28 sps:$4 sm:$0xff]  }
 0x1e3   :  { %2204 = vmatpush1.bf16.msra.mxu1 %v5085_v49  ;;  %v5148_v49 = vld [vmem:[%s7142_s7 + $0x1f8] ss:$28 sps:$4 sm:$0xff]  }
 0x1e4   :  { %2205 = vmatprep.subr.bf16.mxu1 %v5093_v51  ;;  %v5156_v51 = vld [vmem:[%s7142_s7 + $0x234] ss:$28 sps:$4 sm:$0xff]  }
 0x1e5   :  { %2165 = vmatpush1.bf16.msra.mxu0 %v5088_v52  ;;  %v5159_v52 = vld [vmem:[%s7142_s7 + $0x23c] ss:$28 sps:$4 sm:$0xff]  }
 0x1e6   :  { %3685 = vmatprep.subr.bf16.mxu0 %v5096_v54  ;;  %v5157_v54 = vld [vmem:[%s7142_s7 + $0x238] ss:$28 sps:$4 sm:$0xff]  }
 0x1e7   :  { %2206 = vmatpush1.bf16.msra.mxu1 %v5091_v53  ;;  %v5154_v53 = vld [vmem:[%s7142_s7 + $0x230] ss:$28 sps:$4 sm:$0xff]  }
 0x1e8   :  { %3767 = vmatprep.subr.bf16.mxu1 %v5099_v55  ;;  %v5162_v55 = vld [vmem:[%s7142_s7 + $0x26c] ss:$28 sps:$4 sm:$0xff]  }
 0x27d   :  { %v4598_v56 = vpop.f32.mrb[4].mxu1 }
 0x27e   :  { %v4599_v57 = vpop.f32.mrb[5].mxu1 }
 0x27f   :  { %v4600_v58 = vadd.f32 %v4599_v57, %v4598_v56  ;;  %v4601_v59 = vpop.f32.mrb[6].mxu1  ;;  %v5165_v56 = vld [vmem:[%s7142_s7 + $0x274] ss:$28 sps:$4 sm:$0xff]   ;;  %v5160_v57 = vld [vmem:[%s7142_s7 + $0x268] ss:$28 sps:$4 sm:$0xff]  }
 0x280   :  { %v4602_v60 = vpop.f32.mrb[7].mxu1  ;;  %v5168_v59 = vld [vmem:[%s7142_s7 + $0x2a4] ss:$28 sps:$4 sm:$0xff]  }
 0x281   :  { %v1887_v0 = vadd.f32 %v4600_v58, %v4286_v61  ;;  %v5163_v58 = vld [vmem:[%s7142_s7 + $0x270] ss:$28 sps:$4 sm:$0xff]   ;;  %v5166_v61 = vld [vmem:[%s7142_s7 + $0x2a0] ss:$28 sps:$4 sm:$0xff]  }
 0x282   :  { %v5171_v60 = vld [vmem:[%s7142_s7 + $0x2ac] ss:$28 sps:$4 sm:$0xff]  }
 0x29d   :  { %v4620_v62 = vpop.f32.mrb[8].mxu1 }
 0x29e   :  { %v4621_v63 = vpop.f32.mrb[9].mxu1 }
 0x29f   :  { %v4622_v1 = vadd.f32 %v4621_v63, %v4620_v62  ;;  %v4623_v2 = vpop.f32.mrb[10].mxu1  ;;  %v5169_v62 = vld [vmem:[%s7142_s7 + $0x2a8] ss:$28 sps:$4 sm:$0xff]   ;;  %v5174_v63 = vld [vmem:[%s7142_s7 + $0x2dc] ss:$28 sps:$4 sm:$0xff]  }
 0x2a0   :  { %v4624_v3 = vpop.f32.mrb[11].mxu1  ;;  %v5175_v2 = vld [vmem:[%s7142_s7 + $0x2e0] ss:$28 sps:$4 sm:$0xff]  }
 0x2a1   :  { %v1927_v4 = vadd.f32 %v4622_v1, %v1887_v0  ;;  %v5177_v0 = vld [vmem:[%s7142_s7 + $0x2e4] ss:$28 sps:$4 sm:$0xff]   ;;  %v5172_v1 = vld [vmem:[%s7142_s7 + $0x2d8] ss:$28 sps:$4 sm:$0xff]  }
 0x2a2   :  { %v5180_v3 = vld [vmem:[%s7142_s7 + $0x314] ss:$28 sps:$4 sm:$0xff]  }
 0x2a3   :  { %v1932_v5 = vmax.f32 %v1927_v4, 0.0  ;;  %v5183_v4 = vld [vmem:[%s7142_s7 + $0x31c] ss:$28 sps:$4 sm:$0xff]  }
 0x2a5   :  { %v4716_v6 = vround.rtne.f32 %v1932_v5  ;;  %v5178_v5 = vld [vmem:[%s7142_s7 + $0x310] ss:$28 sps:$4 sm:$0xff]  }
 0x2a7   :  { %v1935_v10 = vpack.c.bf16 %v4716_v6, %v4716_v6  ;;  %1934 = vst [vmem:[#allocation4] sm:$0xff] %v4716_v6  ;;  %v5181_v6 = vld [vmem:[%s7142_s7 + $0x318] ss:$28 sps:$4 sm:$0xff]  }
 0x2a9   :  { %2183 = vmatmul.mubr.bf16.vlgmr.msra.gmra.mrb[4].mxu0 %v1935_v10  ;;  %2224 = vmatmul.mubr.bf16.vlgmr.msra.gmra.mrb[12].mxu1 %v1935_v10  ;;  %v5184_v10 = vld [vmem:[%s7142_s7 + $0x348] ss:$28 sps:$4 sm:$0xff]  }
 0x2aa   :  { %3686 = vmatpush1.bf16.msra.mxu0 %v5094_v8  ;;  %3768 = vmatpush1.bf16.msra.mxu1 %v5097_v9  ;;  %v5186_v8 = vld [vmem:[%s7142_s7 + $0x34c] ss:$28 sps:$4 sm:$0xff]   ;;  %v5189_v9 = vld [vmem:[%s7142_s7 + $0x354] ss:$28 sps:$4 sm:$0xff]  }
 0x2ab   :  { %3687 = vmatprep.subr.bf16.mxu0 %v5102_v11  ;;  %3769 = vmatprep.subr.bf16.mxu1 %v5105_v12  ;;  %v5187_v11 = vld [vmem:[%s7142_s7 + $0x350] ss:$28 sps:$4 sm:$0xff]   ;;  %v5192_v12 = vld [vmem:[%s7142_s7 + $0x384] ss:$28 sps:$4 sm:$0xff]  }
 0x2ae   :  { %3688 = vmatpush1.bf16.msra.mxu0 %v5100_v13  ;;  %3770 = vmatpush1.bf16.msra.mxu1 %v5103_v14  ;;  %v5195_v13 = vld [vmem:[%s7142_s7 + $0x38c] ss:$28 sps:$4 sm:$0xff]   ;;  %v6580_v14 = vld [vmem:[%s7141_s6] sm:$0xf] }
 0x2af   :  { %3689 = vmatprep.subr.bf16.mxu0 %v5108_v15  ;;  %3771 = vmatprep.subr.bf16.mxu1 %v5111_v16  ;;  %v1973_v15 = vrot.slane %v6580_v14, %v6216_v38  ;;  %v1977_v16 = vrot.slane %v6580_v14, %v6222_v40 }
 0x2b2   :  { %3690 = vmatpush1.bf16.msra.mxu0 %v5106_v18  ;;  %3772 = vmatpush1.bf16.msra.mxu1 %v5109_v19  ;;  %v1985_v18 = vrot.slane %v6580_v14, %v6225_v41 }
 0x2b3   :  { %3691 = vmatprep.subr.bf16.mxu0 %v5114_v20  ;;  %3773 = vmatprep.subr.bf16.mxu1 %v5117_v21 }
 0x2b6   :  { %3692 = vmatpush1.bf16.msra.mxu0 %v5112_v22  ;;  %3774 = vmatpush1.bf16.msra.mxu1 %v5115_v17 }
 0x2b7   :  { %3693 = vmatprep.subr.bf16.mxu0 %v5120_v23  ;;  %3775 = vmatprep.subr.bf16.mxu1 %v5123_v24 }
 0x2ba   :  { %3694 = vmatpush1.bf16.msra.mxu0 %v5118_v25  ;;  %3776 = vmatpush1.bf16.msra.mxu1 %v5121_v26 }
 0x2bb   :  { %3695 = vmatprep.subr.bf16.mxu0 %v5126_v27  ;;  %3777 = vmatprep.subr.bf16.mxu1 %v5129_v28 }
 0x2be   :  { %3696 = vmatpush1.bf16.msra.mxu0 %v5124_v29  ;;  %3778 = vmatpush1.bf16.msra.mxu1 %v5127_v30 }
 0x2bf   :  { %3697 = vmatprep.subr.bf16.mxu0 %v5132_v31  ;;  %3779 = vmatprep.subr.bf16.mxu1 %v5135_v32 }
 0x2c2   :  { %3698 = vmatpush1.bf16.msra.mxu0 %v5130_v33  ;;  %3780 = vmatpush1.bf16.msra.mxu1 %v5133_v34  ;;  %v5190_v33 = vld [vmem:[%s7142_s7 + $0x380] ss:$28 sps:$4 sm:$0xff]   ;;  %v5193_v34 = vld [vmem:[%s7142_s7 + $0x388] ss:$28 sps:$4 sm:$0xff]  }
 0x2c3   :  { %3699 = vmatprep.subr.bf16.mxu0 %v5138_v35  ;;  %3781 = vmatprep.subr.bf16.mxu1 %v5141_v36  ;;  %v5198_v36 = vld [vmem:[%s7142_s7 + $0x3bc] ss:$28 sps:$4 sm:$0xff]  }
 0x2c6   :  { %3700 = vmatpush1.bf16.msra.mxu0 %v5136_v39  ;;  %3782 = vmatpush1.bf16.msra.mxu1 %v5139_v42  ;;  %v5201_v39 = vld [vmem:[%s7142_s7 + $0x3c4] ss:$28 sps:$4 sm:$0xff]  }
 0x2c7   :  { %3701 = vmatprep.subr.bf16.mxu0 %v5144_v43  ;;  %3783 = vmatprep.subr.bf16.mxu1 %v5147_v44  ;;  %v5196_v43 = vld [vmem:[%s7142_s7 + $0x3b8] ss:$28 sps:$4 sm:$0xff]   ;;  %v5199_v44 = vld [vmem:[%s7142_s7 + $0x3c0] ss:$28 sps:$4 sm:$0xff]  }
 0x2ca   :  { %3702 = vmatpush1.bf16.msra.mxu0 %v5142_v45  ;;  %3784 = vmatpush1.bf16.msra.mxu1 %v5145_v46  ;;  %v5204_v45 = vld [vmem:[%s7142_s7 + $0x3f4] ss:$28 sps:$4 sm:$0xff]   ;;  %v5207_v46 = vld [vmem:[%s7142_s7 + $0x3fc] ss:$28 sps:$4 sm:$0xff]  }
 0x2cb   :  { %3703 = vmatprep.subr.bf16.mxu0 %v5150_v47  ;;  %3785 = vmatprep.subr.bf16.mxu1 %v5153_v48  ;;  %v5202_v47 = vld [vmem:[%s7142_s7 + $0x3f0] ss:$28 sps:$4 sm:$0xff]   ;;  %v5205_v48 = vld [vmem:[%s7142_s7 + $0x3f8] ss:$28 sps:$4 sm:$0xff]  }
 0x2ce   :  { %3704 = vmatpush1.bf16.msra.mxu0 %v5148_v49  ;;  %3786 = vmatpush1.bf16.msra.mxu1 %v5151_v50  ;;  %v5210_v49 = vld [vmem:[%s7142_s7 + $0x42c] ss:$28 sps:$4 sm:$0xff]   ;;  %v5213_v50 = vld [vmem:[%s7142_s7 + $0x434] ss:$28 sps:$4 sm:$0xff]  }
 0x2cf   :  { %3705 = vmatprep.subr.bf16.mxu0 %v5156_v51  ;;  %3787 = vmatprep.subr.bf16.mxu1 %v5159_v52  ;;  %v5208_v51 = vld [vmem:[%s7142_s7 + $0x428] ss:$28 sps:$4 sm:$0xff]   ;;  %v5211_v52 = vld [vmem:[%s7142_s7 + $0x430] ss:$28 sps:$4 sm:$0xff]  }
 0x2d2   :  { %3706 = vmatpush1.bf16.msra.mxu0 %v5154_v53  ;;  %3788 = vmatpush1.bf16.msra.mxu1 %v5157_v54  ;;  %v5216_v53 = vld [vmem:[%s7142_s7 + $0x464] ss:$28 sps:$4 sm:$0xff]   ;;  %v5219_v54 = vld [vmem:[%s7142_s7 + $0x46c] ss:$28 sps:$4 sm:$0xff]  }
 0x2d3   :  { %3707 = vmatprep.subr.bf16.mxu0 %v5162_v55  ;;  %3789 = vmatprep.subr.bf16.mxu1 %v5165_v56  ;;  %v5214_v55 = vld [vmem:[%s7142_s7 + $0x460] ss:$28 sps:$4 sm:$0xff]   ;;  %v5217_v56 = vld [vmem:[%s7142_s7 + $0x468] ss:$28 sps:$4 sm:$0xff]  }
 0x2d6   :  { %3708 = vmatpush1.bf16.msra.mxu0 %v5160_v57  ;;  %3790 = vmatpush1.bf16.msra.mxu1 %v5163_v58  ;;  %v5222_v57 = vld [vmem:[%s7142_s7 + $0x49c] ss:$28 sps:$4 sm:$0xff]   ;;  %v5225_v58 = vld [vmem:[%s7142_s7 + $0x4a4] ss:$28 sps:$4 sm:$0xff]  }
 0x2d7   :  { %3709 = vmatprep.subr.bf16.mxu0 %v5168_v59  ;;  %3791 = vmatprep.subr.bf16.mxu1 %v5171_v60  ;;  %v5220_v59 = vld [vmem:[%s7142_s7 + $0x498] ss:$28 sps:$4 sm:$0xff]   ;;  %v5223_v60 = vld [vmem:[%s7142_s7 + $0x4a0] ss:$28 sps:$4 sm:$0xff]  }
 0x2da   :  { %3710 = vmatpush1.bf16.msra.mxu0 %v5166_v61  ;;  %3792 = vmatpush1.bf16.msra.mxu1 %v5169_v62  ;;  %v5228_v61 = vld [vmem:[%s7142_s7 + $0x4d4] ss:$28 sps:$4 sm:$0xff]   ;;  %v5231_v62 = vld [vmem:[%s7142_s7 + $0x4dc] ss:$28 sps:$4 sm:$0xff]  }
 0x2db   :  { %3711 = vmatprep.subr.bf16.mxu0 %v5174_v63  ;;  %3793 = vmatprep.subr.bf16.mxu1 %v5177_v0  ;;  %v5226_v63 = vld [vmem:[%s7142_s7 + $0x4d0] ss:$28 sps:$4 sm:$0xff]   ;;  %v5229_v0 = vld [vmem:[%s7142_s7 + $0x4d8] ss:$28 sps:$4 sm:$0xff]  }
 0x2de   :  { %3712 = vmatpush1.bf16.msra.mxu0 %v5172_v1  ;;  %3794 = vmatpush1.bf16.msra.mxu1 %v5175_v2  ;;  %v5234_v1 = vld [vmem:[%s7142_s7 + $0x50c] ss:$28 sps:$4 sm:$0xff]   ;;  %v5237_v2 = vld [vmem:[%s7142_s7 + $0x514] ss:$28 sps:$4 sm:$0xff]  }
 0x2df   :  { %3713 = vmatprep.subr.bf16.mxu0 %v5180_v3  ;;  %3795 = vmatprep.subr.bf16.mxu1 %v5183_v4  ;;  %v5232_v3 = vld [vmem:[%s7142_s7 + $0x508] ss:$28 sps:$4 sm:$0xff]   ;;  %v5235_v4 = vld [vmem:[%s7142_s7 + $0x510] ss:$28 sps:$4 sm:$0xff]  }
 0x2e2   :  { %3714 = vmatpush1.bf16.msra.mxu0 %v5178_v5  ;;  %3796 = vmatpush1.bf16.msra.mxu1 %v5181_v6  ;;  %v5240_v5 = vld [vmem:[%s7142_s7 + $0x544] ss:$28 sps:$4 sm:$0xff]   ;;  %v5243_v6 = vld [vmem:[%s7142_s7 + $0x54c] ss:$28 sps:$4 sm:$0xff]  }
 0x2e3   :  { %3715 = vmatprep.subr.bf16.mxu0 %v5186_v8  ;;  %3797 = vmatprep.subr.bf16.mxu1 %v5189_v9  ;;  %v5238_v8 = vld [vmem:[%s7142_s7 + $0x540] ss:$28 sps:$4 sm:$0xff]   ;;  %v5241_v9 = vld [vmem:[%s7142_s7 + $0x548] ss:$28 sps:$4 sm:$0xff]  }
 0x2e6   :  { %3716 = vmatpush1.bf16.msra.mxu0 %v5184_v10  ;;  %3798 = vmatpush1.bf16.msra.mxu1 %v5187_v11  ;;  %v5246_v10 = vld [vmem:[%s7142_s7 + $0x57c] ss:$28 sps:$4 sm:$0xff]   ;;  %v5249_v11 = vld [vmem:[%s7142_s7 + $0x584] ss:$28 sps:$4 sm:$0xff]  }
 0x2e7   :  { %3726 = vmatprep.subr.bf16.mxu0 %v5192_v12  ;;  %3808 = vmatprep.subr.bf16.mxu1 %v5195_v13  ;;  %v5244_v12 = vld [vmem:[%s7142_s7 + $0x578] ss:$28 sps:$4 sm:$0xff]   ;;  %v5247_v13 = vld [vmem:[%s7142_s7 + $0x580] ss:$28 sps:$4 sm:$0xff]  }
 0x37c   :  { %v2184_v19 = vpop.f32.mrb[4].mxu0  ;;  %v6588_v20 = vpop.f32.mrb[12].mxu1 }
 0x37d   :  { %v2185_v21 = vadd.f32 %v2184_v19, %v1973_v15  ;;  %v2186_v22 = vpop.f32.mrb[5].mxu0  ;;  %v2227_v17 = vpop.f32.mrb[13].mxu1  ;;  %v5252_v15 = vld [vmem:[%s7142_s7 + $0x5b4] ss:$28 sps:$4 sm:$0xff]  }
 0x37e   :  { %v2187_v23 = vadd.f32 %v2186_v22, %v1977_v16  ;;  %v2228_v24 = vadd.f32 %v2227_v17, %v1985_v18  ;;  %v2188_v25 = vpop.f32.mrb[6].mxu0  ;;  %v2229_v26 = vpop.f32.mrb[14].mxu1  ;;  %v5255_v16 = vld [vmem:[%s7142_s7 + $0x5bc] ss:$28 sps:$4 sm:$0xff]   ;;  %v5250_v18 = vld [vmem:[%s7142_s7 + $0x5b0] ss:$28 sps:$4 sm:$0xff]  }
 0x37f   :  { %v2232_v27 = vmax.f32 %v2185_v21, 0.0  ;;  %v2189_v28 = vpop.f32.mrb[7].mxu0  ;;  %v2230_v29 = vpop.f32.mrb[15].mxu1  ;;  %v5253_v19 = vld [vmem:[%s7142_s7 + $0x5b8] ss:$28 sps:$4 sm:$0xff]  }
 0x380   :  { %v2233_v30 = vmax.f32 %v2187_v23, 0.0  ;;  %v2235_v31 = vmax.f32 %v2228_v24, 0.0  ;;  %v5258_v21 = vld [vmem:[%s7142_s7 + $0x5ec] ss:$28 sps:$4 sm:$0xff]   ;;  %v5261_v22 = vld [vmem:[%s7142_s7 + $0x5f4] ss:$28 sps:$4 sm:$0xff]  }
 0x381   :  { %v6598_v35 = vpack.c.bf16 %v2232_v27, %v2232_v27  ;;  %v5256_v17 = vld [vmem:[%s7142_s7 + $0x5e8] ss:$28 sps:$4 sm:$0xff]   ;;  %v5259_v23 = vld [vmem:[%s7142_s7 + $0x5f0] ss:$28 sps:$4 sm:$0xff]   ;;  %v5262_v26 = vld [vmem:[%s7142_s7 + $0x620] ss:$28 sps:$4 sm:$0xff]  }
 0x382   :  { %v6590_v32 = vpack.c.bf16 %v2233_v30, %v2233_v30  ;;  %v6608_v42 = vpack.c.bf16 %v2235_v31, %v2235_v31  ;;  %v5264_v24 = vld [vmem:[%s7142_s7 + $0x624] ss:$28 sps:$4 sm:$0xff]   ;;  %v5267_v25 = vld [vmem:[%s7142_s7 + $0x62c] ss:$28 sps:$4 sm:$0xff]   ;;  %v5270_v28 = vld [vmem:[%s7142_s7 + $0x65c] ss:$28 sps:$4 sm:$0xff]  }
 0x383   :  { %v5265_v27 = vld [vmem:[%s7142_s7 + $0x628] ss:$28 sps:$4 sm:$0xff]   ;;  %v5268_v30 = vld [vmem:[%s7142_s7 + $0x658] ss:$28 sps:$4 sm:$0xff]   ;;  %v5271_v31 = vld [vmem:[%s7142_s7 + $0x660] ss:$28 sps:$4 sm:$0xff]  }
 0x384   :  { %3717 = vmatprep.mubr.bf16.mxu0 %v6590_v32  ;;  %3799 = vmatprep.mubr.bf16.mxu1 %v6590_v32  ;;  %v5273_v29 = vld [vmem:[%s7142_s7 + $0x664] ss:$28 sps:$4 sm:$0xff]  }
 0x385   :  { %3718 = vmatmul.mubr.bf16.vlgmr.msra.gmra.mrb[8].mxu0 %v6598_v35  ;;  %3800 = vmatmul.mubr.bf16.vlgmr.msra.gmra.mrb[16].mxu1 %v6598_v35 }
 0x386   :  { %3727 = vmatpush1.bf16.msra.mxu0 %v5190_v33  ;;  %3809 = vmatpush1.bf16.msra.mxu1 %v5193_v34  ;;  %v1981_v33 = vrot.slane %v6580_v14, %v6258_v7  ;;  %v5276_v34 = vld [vmem:[%s7142_s7 + $0x694] ss:$28 sps:$4 sm:$0xff]  }
 0x387   :  { %3758 = vmatprep.mubr.bf16.mxu0 %v6608_v42  ;;  %3840 = vmatprep.mubr.bf16.mxu1 %v6608_v42  ;;  %v5277_v14 = vld [vmem:[%s7142_s7 + $0x698] ss:$28 sps:$4 sm:$0xff]  }
 0x388   :  { %3728 = vmatprep.subr.bf16.mxu0 %v5198_v36  ;;  %3810 = vmatprep.subr.bf16.mxu1 %v5201_v39  ;;  %v5279_v36 = vld [vmem:[%s7142_s7 + $0x69c] ss:$28 sps:$4 sm:$0xff]   ;;  %v5274_v39 = vld [vmem:[%s7142_s7 + $0x690] ss:$28 sps:$4 sm:$0xff]  }
 0x38a   :  { %3729 = vmatpush1.bf16.msra.mxu0 %v5196_v43  ;;  %3811 = vmatpush1.bf16.msra.mxu1 %v5199_v44  ;;  %v2226_v43 = vadd.f32 %v6588_v20, %v1981_v33  ;;  %v5282_v44 = vld [vmem:[%s7142_s7 + $0x6cc] ss:$28 sps:$4 sm:$0xff]   ;;  %v5344_v33 = vld [vmem:[%s7142_s7 + $0x600] ss:$28 sps:$4 sm:$0xff]  }
 0x38b   :  { %3730 = vmatprep.subr.bf16.mxu0 %v5204_v45  ;;  %3812 = vmatprep.subr.bf16.mxu1 %v5207_v46  ;;  %v5285_v45 = vld [vmem:[%s7142_s7 + $0x6d4] ss:$28 sps:$4 sm:$0xff]   ;;  %v5280_v46 = vld [vmem:[%s7142_s7 + $0x6c8] ss:$28 sps:$4 sm:$0xff]  }
 0x38c   :  { %v5283_v20 = vld [vmem:[%s7142_s7 + $0x6d0] ss:$28 sps:$4 sm:$0xff]  }
 0x38e   :  { %3731 = vmatpush1.bf16.msra.mxu0 %v5202_v47  ;;  %3813 = vmatpush1.bf16.msra.mxu1 %v5205_v48  ;;  %v2234_v47 = vmax.f32 %v2226_v43, 0.0  ;;  %v5288_v48 = vld [vmem:[%s7142_s7 + $0x14] ss:$28 sps:$4 sm:$0xff]  }
 0x38f   :  { %3732 = vmatprep.subr.bf16.mxu0 %v5210_v49  ;;  %3814 = vmatprep.subr.bf16.mxu1 %v5213_v50  ;;  %v5289_v49 = vld [vmem:[%s7142_s7 + $0x1d8] ss:$28 sps:$4 sm:$0xff]   ;;  %v5286_v50 = vld [vmem:[%s7142_s7 + $0x10] ss:$28 sps:$4 sm:$0xff]  }
 0x390   :  { %v5346_v43 = vld [vmem:[%s7142_s7 + $0x2b0] ss:$28 sps:$4 sm:$0xff]  }
 0x392   :  { %3733 = vmatpush1.bf16.msra.mxu0 %v5208_v51  ;;  %3815 = vmatpush1.bf16.msra.mxu1 %v5211_v52  ;;  %v6800_v51 = vpack.c.bf16 %v2234_v47, %v2234_v47  ;;  %v5290_v52 = vld [vmem:[%s7142_s7 + $0x18] ss:$28 sps:$4 sm:$0xff]   ;;  %v5355_v47 = vld [vmem:[%s7142_s7 + $0x4b0] ss:$28 sps:$4 sm:$0xff]  }
 0x393   :  { %3734 = vmatprep.subr.bf16.mxu0 %v5216_v53  ;;  %3816 = vmatprep.subr.bf16.mxu1 %v5219_v54  ;;  %v5293_v53 = vld [vmem:[%s7142_s7 + $0x4c] ss:$28 sps:$4 sm:$0xff]  }
 0x394   :  { %v5294_v54 = vld [vmem:[%s7142_s7 + $0x210] ss:$28 sps:$4 sm:$0xff]  }
 0x396   :  { %3735 = vmatpush1.bf16.msra.mxu0 %v5214_v55  ;;  %3817 = vmatpush1.bf16.msra.mxu1 %v5217_v56  ;;  %v5291_v55 = vld [vmem:[%s7142_s7 + $0x48] ss:$28 sps:$4 sm:$0xff]   ;;  %v5295_v56 = vld [vmem:[%s7142_s7 + $0x50] ss:$28 sps:$4 sm:$0xff]  }
 0x397   :  { %3736 = vmatprep.subr.bf16.mxu0 %v5222_v57  ;;  %3818 = vmatprep.subr.bf16.mxu1 %v5225_v58  ;;  %v5298_v57 = vld [vmem:[%s7142_s7 + $0x84] ss:$28 sps:$4 sm:$0xff]  }
 0x398   :  { %v5299_v58 = vld [vmem:[%s7142_s7 + $0x248] ss:$28 sps:$4 sm:$0xff]  }
 0x39a   :  { %3737 = vmatpush1.bf16.msra.mxu0 %v5220_v59  ;;  %3819 = vmatpush1.bf16.msra.mxu1 %v5223_v60  ;;  %v5296_v59 = vld [vmem:[%s7142_s7 + $0x80] ss:$28 sps:$4 sm:$0xff]  }
 0x39b   :  { %3738 = vmatprep.subr.bf16.mxu0 %v5228_v61  ;;  %3820 = vmatprep.subr.bf16.mxu1 %v5231_v62  ;;  %v5303_v60 = vld [vmem:[%s7142_s7 + $0xbc] ss:$28 sps:$4 sm:$0xff]  }
 0x39c   :  { %v5304_v61 = vld [vmem:[%s7142_s7 + $0x280] ss:$28 sps:$4 sm:$0xff]   ;;  %v5301_v62 = vld [vmem:[%s7142_s7 + $0xb8] ss:$28 sps:$4 sm:$0xff]  }
 0x39e   :  { %3739 = vmatpush1.bf16.msra.mxu0 %v5226_v63  ;;  %3821 = vmatpush1.bf16.msra.mxu1 %v5229_v0  ;;  %v5305_v63 = vld [vmem:[%s7142_s7 + $0xc0] ss:$28 sps:$4 sm:$0xff]   ;;  %v5308_v0 = vld [vmem:[%s7142_s7 + $0xf4] ss:$28 sps:$4 sm:$0xff]  }
 0x39f   :  { %3740 = vmatprep.subr.bf16.mxu0 %v5234_v1  ;;  %3822 = vmatprep.subr.bf16.mxu1 %v5237_v2  ;;  %v5309_v1 = vld [vmem:[%s7142_s7 + $0x2b8] ss:$28 sps:$4 sm:$0xff]   ;;  %v5306_v2 = vld [vmem:[%s7142_s7 + $0xf0] ss:$28 sps:$4 sm:$0xff]  }
 0x3a2   :  { %3741 = vmatpush1.bf16.msra.mxu0 %v5232_v3  ;;  %3823 = vmatpush1.bf16.msra.mxu1 %v5235_v4  ;;  %v5310_v3 = vld [vmem:[%s7142_s7 + $0xf8] ss:$28 sps:$4 sm:$0xff]   ;;  %v5313_v4 = vld [vmem:[%s7142_s7 + $0x12c] ss:$28 sps:$4 sm:$0xff]  }
 0x3a3   :  { %3742 = vmatprep.subr.bf16.mxu0 %v5240_v5  ;;  %3824 = vmatprep.subr.bf16.mxu1 %v5243_v6  ;;  %v5314_v5 = vld [vmem:[%s7142_s7 + $0x2f0] ss:$28 sps:$4 sm:$0xff]   ;;  %v5311_v6 = vld [vmem:[%s7142_s7 + $0x128] ss:$28 sps:$4 sm:$0xff]  }
 0x3a6   :  { %3743 = vmatpush1.bf16.msra.mxu0 %v5238_v8  ;;  %3825 = vmatpush1.bf16.msra.mxu1 %v5241_v9  ;;  %v5315_v8 = vld [vmem:[%s7142_s7 + $0x130] ss:$28 sps:$4 sm:$0xff]   ;;  %v5318_v9 = vld [vmem:[%s7142_s7 + $0x164] ss:$28 sps:$4 sm:$0xff]  }
 0x3a7   :  { %3744 = vmatprep.subr.bf16.mxu0 %v5246_v10  ;;  %3826 = vmatprep.subr.bf16.mxu1 %v5249_v11  ;;  %v5319_v10 = vld [vmem:[%s7142_s7 + $0x328] ss:$28 sps:$4 sm:$0xff]   ;;  %v5316_v11 = vld [vmem:[%s7142_s7 + $0x160] ss:$28 sps:$4 sm:$0xff]  }
 0x3aa   :  { %3745 = vmatpush1.bf16.msra.mxu0 %v5244_v12  ;;  %3827 = vmatpush1.bf16.msra.mxu1 %v5247_v13  ;;  %v5320_v12 = vld [vmem:[%s7142_s7 + $0x168] ss:$28 sps:$4 sm:$0xff]   ;;  %v5323_v13 = vld [vmem:[%s7142_s7 + $0x19c] ss:$28 sps:$4 sm:$0xff]  }
 0x3ab   :  { %3746 = vmatprep.subr.bf16.mxu0 %v5252_v15  ;;  %3828 = vmatprep.subr.bf16.mxu1 %v5255_v16  ;;  %v5324_v15 = vld [vmem:[%s7142_s7 + $0x360] ss:$28 sps:$4 sm:$0xff]   ;;  %v5321_v16 = vld [vmem:[%s7142_s7 + $0x198] ss:$28 sps:$4 sm:$0xff]  }
 0x3ae   :  { %3747 = vmatpush1.bf16.msra.mxu0 %v5250_v18  ;;  %3829 = vmatpush1.bf16.msra.mxu1 %v5253_v19  ;;  %v5325_v18 = vld [vmem:[%s7142_s7 + $0x1a0] ss:$28 sps:$4 sm:$0xff]   ;;  %v5328_v19 = vld [vmem:[%s7142_s7 + $0x1d4] ss:$28 sps:$4 sm:$0xff]  }
 0x3af   :  { %3748 = vmatprep.subr.bf16.mxu0 %v5258_v21  ;;  %3830 = vmatprep.subr.bf16.mxu1 %v5261_v22  ;;  %v5329_v21 = vld [vmem:[%s7142_s7 + $0x558] ss:$28 sps:$4 sm:$0xff]   ;;  %v5326_v22 = vld [vmem:[%s7142_s7 + $0x1d0] ss:$28 sps:$4 sm:$0xff]  }
 0x3b2   :  { %3749 = vmatpush1.bf16.msra.mxu0 %v5256_v17  ;;  %3831 = vmatpush1.bf16.msra.mxu1 %v5259_v23  ;;  %v5330_v17 = vld [vmem:[%s7142_s7 + $0x398] ss:$28 sps:$4 sm:$0xff]   ;;  %v5333_v23 = vld [vmem:[%s7142_s7 + $0x20c] ss:$28 sps:$4 sm:$0xff]  }
 0x3b3   :  { %3750 = vmatprep.subr.bf16.mxu0 %v5264_v24  ;;  %3832 = vmatprep.subr.bf16.mxu1 %v5267_v25  ;;  %v5334_v24 = vld [vmem:[%s7142_s7 + $0x590] ss:$28 sps:$4 sm:$0xff]   ;;  %v5331_v25 = vld [vmem:[%s7142_s7 + $0x208] ss:$28 sps:$4 sm:$0xff]  }
 0x3b6   :  { %3751 = vmatpush1.bf16.msra.mxu0 %v5262_v26  ;;  %3833 = vmatpush1.bf16.msra.mxu1 %v5265_v27  ;;  %v5335_v26 = vld [vmem:[%s7142_s7 + $0x3d0] ss:$28 sps:$4 sm:$0xff]   ;;  %v5338_v27 = vld [vmem:[%s7142_s7 + $0x244] ss:$28 sps:$4 sm:$0xff]  }
 0x3b7   :  { %3752 = vmatprep.subr.bf16.mxu0 %v5270_v28  ;;  %3834 = vmatprep.subr.bf16.mxu1 %v5273_v29  ;;  %v5339_v28 = vld [vmem:[%s7142_s7 + $0x5c8] ss:$28 sps:$4 sm:$0xff]   ;;  %v5336_v29 = vld [vmem:[%s7142_s7 + $0x240] ss:$28 sps:$4 sm:$0xff]  }
 0x3ba   :  { %3753 = vmatpush1.bf16.msra.mxu0 %v5268_v30  ;;  %3835 = vmatpush1.bf16.msra.mxu1 %v5271_v31  ;;  %v5340_v30 = vld [vmem:[%s7142_s7 + $0x408] ss:$28 sps:$4 sm:$0xff]   ;;  %v5343_v31 = vld [vmem:[%s7142_s7 + $0x27c] ss:$28 sps:$4 sm:$0xff]  }
 0x3bb   :  { %3754 = vmatprep.subr.bf16.mxu0 %v5276_v34  ;;  %3836 = vmatprep.subr.bf16.mxu1 %v5279_v36  ;;  %v5341_v34 = vld [vmem:[%s7142_s7 + $0x278] ss:$28 sps:$4 sm:$0xff]   ;;  %v5345_v36 = vld [vmem:[%s7142_s7 + $0x440] ss:$28 sps:$4 sm:$0xff]  }
 0x3be   :  { %3755 = vmatpush1.bf16.msra.mxu0 %v5274_v39  ;;  %3837 = vmatpush1.bf16.msra.mxu1 %v5277_v14  ;;  %v5348_v39 = vld [vmem:[%s7142_s7 + $0x2b4] ss:$28 sps:$4 sm:$0xff]  }
 0x3bf   :  { %3756 = vmatprep.subr.bf16.mxu0 %v5282_v44  ;;  %3838 = vmatprep.subr.bf16.mxu1 %v5285_v45  ;;  %v5349_v14 = vld [vmem:[%s7142_s7 + $0x638] ss:$28 sps:$4 sm:$0xff]   ;;  %v5353_v45 = vld [vmem:[%s7142_s7 + $0x2ec] ss:$28 sps:$4 sm:$0xff]  }
 0x3c0   :  { %v5350_v44 = vld [vmem:[%s7142_s7 + $0x478] ss:$28 sps:$4 sm:$0xff]  }
 0x3c2   :  { %3757 = vmatpush1.bf16.msra.mxu0 %v5280_v46  ;;  %3839 = vmatpush1.bf16.msra.mxu1 %v5283_v20  ;;  %v5354_v46 = vld [vmem:[%s7142_s7 + $0x670] ss:$28 sps:$4 sm:$0xff]   ;;  %v5351_v20 = vld [vmem:[%s7142_s7 + $0x2e8] ss:$28 sps:$4 sm:$0xff]  }
 0x3c3   :  { %3849 = vmatprep.subr.bf16.mxu0 %v5288_v48  ;;  %4626 = vmatprep.subr.bf16.mxu1 %v5289_v49  ;;  %v5358_v48 = vld [vmem:[%s7142_s7 + $0x324] ss:$28 sps:$4 sm:$0xff]  }
 0x3c4   :  { %v5359_v49 = vld [vmem:[%s7142_s7 + $0x6a8] ss:$28 sps:$4 sm:$0xff]  }
 0x3c5   :  { %3759 = vmatmul.mubr.bf16.vlgmr.msra.gmra.mrb[8].mxu0 %v6800_v51  ;;  %3841 = vmatmul.mubr.bf16.vlgmr.msra.gmra.mrb[16].mxu1 %v6800_v51 }
 0x3c6   :  { %3850 = vmatpush1.bf16.msra.mxu0 %v5286_v50  ;;  %3881 = vmatprep.mubr.bf16.mxu0 %v6590_v32  ;;  %v5356_v50 = vld [vmem:[%s7142_s7 + $0x320] ss:$28 sps:$4 sm:$0xff]  }
 0x3c7   :  { %4627 = vmatpush3.bf16.msra.mxu1 %v5290_v52  ;;  %3963 = vmatprep.mubr.bf16.mxu1 %v6590_v32  ;;  %v5300_v32 = vld [vmem:[%s7142_s7 + $0x88] ss:$28 sps:$4 sm:$0xff]  }
 0x3c8   :  { %3851 = vmatprep.subr.bf16.mxu0 %v5293_v53  ;;  %4628 = vmatprep.subr.bf16.mxu1 %v5294_v54  ;;  %v5360_v52 = vld [vmem:[%s7142_s7 + $0x4e8] ss:$28 sps:$4 sm:$0xff]   ;;  %v5363_v53 = vld [vmem:[%s7142_s7 + $0x35c] ss:$28 sps:$4 sm:$0xff]  }
 0x3c9   :  { %v5364_v54 = vld [vmem:[%s7142_s7 + $0x6e0] ss:$28 sps:$4 sm:$0xff]  }
 0x3ca   :  { %3852 = vmatpush1.bf16.msra.mxu0 %v5291_v55  ;;  %v5361_v55 = vld [vmem:[%s7142_s7 + $0x358] ss:$28 sps:$4 sm:$0xff]  }
 0x3cb   :  { %4629 = vmatpush3.bf16.msra.mxu1 %v5295_v56  ;;  %3853 = vmatprep.subr.bf16.mxu0 %v5298_v57  ;;  %v5365_v56 = vld [vmem:[%s7142_s7 + $0x520] ss:$28 sps:$4 sm:$0xff]   ;;  %v5368_v57 = vld [vmem:[%s7142_s7 + $0x394] ss:$28 sps:$4 sm:$0xff]  }
 0x3cc   :  { %4630 = vmatprep.subr.bf16.mxu1 %v5299_v58  ;;  %v5366_v58 = vld [vmem:[%s7142_s7 + $0x390] ss:$28 sps:$4 sm:$0xff]  }
 0x3ce   :  { %3854 = vmatpush1.bf16.msra.mxu0 %v5296_v59  ;;  %v5371_v59 = vld [vmem:[%s7142_s7 + $0x3cc] ss:$28 sps:$4 sm:$0xff]  }
 0x3cf   :  { %4631 = vmatpush3.bf16.msra.mxu1 %v5300_v32  ;;  %3855 = vmatprep.subr.bf16.mxu0 %v5303_v60  ;;  %v5369_v32 = vld [vmem:[%s7142_s7 + $0x3c8] ss:$28 sps:$4 sm:$0xff]  }
 0x3d0   :  { %4632 = vmatprep.subr.bf16.mxu1 %v5304_v61  ;;  %v5374_v60 = vld [vmem:[%s7142_s7 + $0x404] ss:$28 sps:$4 sm:$0xff]  }
 0x3d1   :  { %v5372_v61 = vld [vmem:[%s7142_s7 + $0x400] ss:$28 sps:$4 sm:$0xff]  }
 0x3d2   :  { %3856 = vmatpush1.bf16.msra.mxu0 %v5301_v62  ;;  %v5380_v62 = vld [vmem:[%s7142_s7 + $0x474] ss:$28 sps:$4 sm:$0xff]  }
 0x3d3   :  { %4633 = vmatpush3.bf16.msra.mxu1 %v5305_v63  ;;  %3857 = vmatprep.subr.bf16.mxu0 %v5308_v0  ;;  %v5378_v63 = vld [vmem:[%s7142_s7 + $0x470] ss:$28 sps:$4 sm:$0xff]  }
 0x3d4   :  { %4634 = vmatprep.subr.bf16.mxu1 %v5309_v1  ;;  %v5383_v0 = vld [vmem:[%s7142_s7 + $0x4ac] ss:$28 sps:$4 sm:$0xff]  }
 0x3d5   :  { %v5381_v1 = vld [vmem:[%s7142_s7 + $0x4a8] ss:$28 sps:$4 sm:$0xff]  }
 0x3d6   :  { %3858 = vmatpush1.bf16.msra.mxu0 %v5306_v2  ;;  %v5386_v2 = vld [vmem:[%s7142_s7 + $0x4e4] ss:$28 sps:$4 sm:$0xff]  }
 0x3d7   :  { %4635 = vmatpush3.bf16.msra.mxu1 %v5310_v3  ;;  %3859 = vmatprep.subr.bf16.mxu0 %v5313_v4  ;;  %v5384_v3 = vld [vmem:[%s7142_s7 + $0x4e0] ss:$28 sps:$4 sm:$0xff]  }
 0x3d8   :  { %4636 = vmatprep.subr.bf16.mxu1 %v5314_v5  ;;  %v5389_v4 = vld [vmem:[%s7142_s7 + $0x51c] ss:$28 sps:$4 sm:$0xff]  }
 0x3d9   :  { %v5387_v5 = vld [vmem:[%s7142_s7 + $0x518] ss:$28 sps:$4 sm:$0xff]  }
 0x3da   :  { %3860 = vmatpush1.bf16.msra.mxu0 %v5311_v6  ;;  %v5392_v6 = vld [vmem:[%s7142_s7 + $0x554] ss:$28 sps:$4 sm:$0xff]  }
 0x3db   :  { %4637 = vmatpush3.bf16.msra.mxu1 %v5315_v8  ;;  %3861 = vmatprep.subr.bf16.mxu0 %v5318_v9  ;;  %v5390_v8 = vld [vmem:[%s7142_s7 + $0x550] ss:$28 sps:$4 sm:$0xff]  }
 0x3dc   :  { %4638 = vmatprep.subr.bf16.mxu1 %v5319_v10  ;;  %v5395_v9 = vld [vmem:[%s7142_s7 + $0x58c] ss:$28 sps:$4 sm:$0xff]  }
 0x3dd   :  { %v5393_v10 = vld [vmem:[%s7142_s7 + $0x588] ss:$28 sps:$4 sm:$0xff]  }
 0x3de   :  { %3862 = vmatpush1.bf16.msra.mxu0 %v5316_v11  ;;  %v5398_v11 = vld [vmem:[%s7142_s7 + $0x5c4] ss:$28 sps:$4 sm:$0xff]  }
 0x3df   :  { %4639 = vmatpush3.bf16.msra.mxu1 %v5320_v12  ;;  %3863 = vmatprep.subr.bf16.mxu0 %v5323_v13  ;;  %v5396_v12 = vld [vmem:[%s7142_s7 + $0x5c0] ss:$28 sps:$4 sm:$0xff]  }
 0x3e0   :  { %4640 = vmatprep.subr.bf16.mxu1 %v5324_v15  ;;  %v5401_v13 = vld [vmem:[%s7142_s7 + $0x5fc] ss:$28 sps:$4 sm:$0xff]  }
 0x3e1   :  { %v5399_v15 = vld [vmem:[%s7142_s7 + $0x5f8] ss:$28 sps:$4 sm:$0xff]  }
 0x3e2   :  { %3864 = vmatpush1.bf16.msra.mxu0 %v5321_v16  ;;  %v5404_v16 = vld [vmem:[%s7142_s7 + $0x634] ss:$28 sps:$4 sm:$0xff]  }
 0x3e3   :  { %4641 = vmatpush3.bf16.msra.mxu1 %v5325_v18  ;;  %3865 = vmatprep.subr.bf16.mxu0 %v5328_v19  ;;  %v5402_v18 = vld [vmem:[%s7142_s7 + $0x630] ss:$28 sps:$4 sm:$0xff]  }
 0x3e4   :  { %4648 = vmatprep.subr.bf16.mxu1 %v5329_v21  ;;  %v5407_v19 = vld [vmem:[%s7142_s7 + $0x66c] ss:$28 sps:$4 sm:$0xff]  }
 0x3e5   :  { %v5405_v21 = vld [vmem:[%s7142_s7 + $0x668] ss:$28 sps:$4 sm:$0xff]  }
 0x3e6   :  { %3964 = vmatmul.mubr.bf16.vlgmr.msra.gmra.mrb[20].mxu1 %v6598_v35  ;;  %3866 = vmatpush1.bf16.msra.mxu0 %v5326_v22  ;;  %v5410_v22 = vld [vmem:[%s7142_s7 + $0x6a4] ss:$28 sps:$4 sm:$0xff]  }
 0x3e7   :  { %4649 = vmatpush3.bf16.msra.mxu1 %v5330_v17  ;;  %4003 = vmatprep.mubr.bf16.mxu1 %v6608_v42  ;;  %v5408_v17 = vld [vmem:[%s7142_s7 + $0x6a0] ss:$28 sps:$4 sm:$0xff]  }
 0x3e8   :  { %3867 = vmatprep.subr.bf16.mxu0 %v5333_v23  ;;  %4650 = vmatprep.subr.bf16.mxu1 %v5334_v24  ;;  %v5413_v23 = vld [vmem:[%s7142_s7 + $0x6dc] ss:$28 sps:$4 sm:$0xff]  }
 0x3e9   :  { %v5411_v24 = vld [vmem:[%s7142_s7 + $0x6d8] ss:$28 sps:$4 sm:$0xff]  }
 0x3ea   :  { %3868 = vmatpush1.bf16.msra.mxu0 %v5331_v25  ;;  %v7094_v25 = vld [vmem:[%s7143_s8] sm:$0x7f] }
 0x3eb   :  { %4651 = vmatpush3.bf16.msra.mxu1 %v5335_v26  ;;  %3869 = vmatprep.subr.bf16.mxu0 %v5338_v27  ;;  %v2501_v26 = vrot.slane %v7094_v25, %v6216_v38  ;;  %v2509_v27 = vrot.slane %v7094_v25, %v6258_v7 }
 0x3ec   :  { %4652 = vmatprep.subr.bf16.mxu1 %v5339_v28  ;;  %v2505_v28 = vrot.slane %v7094_v25, %v6222_v40 }
 0x3ee   :  { %3870 = vmatpush1.bf16.msra.mxu0 %v5336_v29  ;;  %v2513_v29 = vrot.slane %v7094_v25, %v6225_v41 }
 0x3ef   :  { %4653 = vmatpush3.bf16.msra.mxu1 %v5340_v30  ;;  %3871 = vmatprep.subr.bf16.mxu0 %v5343_v31 }
 0x3f0   :  { %4654 = vmatprep.subr.bf16.mxu1 %v5344_v33 }
 0x3f2   :  { %3872 = vmatpush1.bf16.msra.mxu0 %v5341_v34 }
 0x3f3   :  { %4655 = vmatpush3.bf16.msra.mxu1 %v5345_v36  ;;  %3873 = vmatprep.subr.bf16.mxu0 %v5348_v39 }
 0x3f4   :  { %4656 = vmatprep.subr.bf16.mxu1 %v5349_v14 }
 0x3f6   :  { %3874 = vmatpush1.bf16.msra.mxu0 %v5346_v43 }
 0x3f7   :  { %4657 = vmatpush3.bf16.msra.mxu1 %v5350_v44  ;;  %3875 = vmatprep.subr.bf16.mxu0 %v5353_v45 }
 0x3f8   :  { %4658 = vmatprep.subr.bf16.mxu1 %v5354_v46 }
 0x3fa   :  { %3876 = vmatpush1.bf16.msra.mxu0 %v5351_v20 }
 0x3fb   :  { %4659 = vmatpush3.bf16.msra.mxu1 %v5355_v47  ;;  %3877 = vmatprep.subr.bf16.mxu0 %v5358_v48 }
 0x3fc   :  { %4660 = vmatprep.subr.bf16.mxu1 %v5359_v49 }
 0x3fe   :  { %3878 = vmatpush1.bf16.msra.mxu0 %v5356_v50 }
 0x3ff   :  { %4661 = vmatpush3.bf16.msra.mxu1 %v5360_v52  ;;  %3879 = vmatprep.subr.bf16.mxu0 %v5363_v53 }
 0x400   :  { %4662 = vmatprep.subr.bf16.mxu1 %v5364_v54 }
 0x402   :  { %3880 = vmatpush1.bf16.msra.mxu0 %v5361_v55 }
 0x403   :  { %4663 = vmatpush3.bf16.msra.mxu1 %v5365_v56  ;;  %3890 = vmatprep.subr.bf16.mxu0 %v5368_v57 }
 0x405   :  { %3882 = vmatmul.mubr.bf16.vlgmr.msra.gmra.mrb[12].mxu0 %v6598_v35  ;;  %v5377_v35 = vld [vmem:[%s7142_s7 + $0x43c] ss:$28 sps:$4 sm:$0xff]  }
 0x406   :  { %4004 = vmatmul.mubr.bf16.vlgmr.msra.gmra.mrb[24].mxu1 %v6800_v51  ;;  %3891 = vmatpush1.bf16.msra.mxu0 %v5366_v58 }
 0x407   :  { %3922 = vmatprep.mubr.bf16.mxu0 %v6608_v42  ;;  %3892 = vmatprep.subr.bf16.mxu0 %v5371_v59  ;;  %v5375_v42 = vld [vmem:[%s7142_s7 + $0x438] ss:$28 sps:$4 sm:$0xff]   ;;  %s5491_s7 = smov [#allocation4]  }
 0x408   :  { %s4076_s8 = sshll.u32 %s5491_s7, 4  ;;  %s4077_s8 = int_to_ptr.vmem [resolvable:$true] %s4076_s8 }
 0x409   :  { %s5442_s30 = scalar_lea.vmem %s4077_s8, 128  ;;  %p5447_p1 = scmp.lt.s32.totalorder %s4077_s8, %s4077_s8 }
 0x40a   :  { %3893 = vmatpush1.bf16.msra.mxu0 %v5369_v32  ;;  %p5443_p0 = scmp.ne.s32.totalorder %s4077_s8, %s5442_s30  ;;  %p5448_p2 = scmp.lt.s32.totalorder %s5442_s30, %s5442_s30 }
 0x40b   :  { %3894 = vmatprep.subr.bf16.mxu0 %v5374_v60 }
 0x40c   :  { %p5449_p3 = por %p5448_p2, %p5447_p1 }
 0x40e   :  { %3895 = vmatpush1.bf16.msra.mxu0 %v5372_v61  ;;  %p5450_p4 = pnand %p5449_p3, %p5443_p0 }
 0x40f   :  { %3896 = vmatprep.subr.bf16.mxu0 %v5377_v35 }
 0x412   :  { %3897 = vmatpush1.bf16.msra.mxu0 %v5375_v42 }
 0x413   :  { %3898 = vmatprep.subr.bf16.mxu0 %v5380_v62 }
 0x416   :  { %3899 = vmatpush1.bf16.msra.mxu0 %v5378_v63 }
 0x417   :  { %3900 = vmatprep.subr.bf16.mxu0 %v5383_v0 }
 0x41a   :  { %3901 = vmatpush1.bf16.msra.mxu0 %v5381_v1 }
 0x41b   :  { %3902 = vmatprep.subr.bf16.mxu0 %v5386_v2 }
 0x41e   :  { %3903 = vmatpush1.bf16.msra.mxu0 %v5384_v3 }
 0x41f   :  { %3904 = vmatprep.subr.bf16.mxu0 %v5389_v4 }
 0x422   :  { %3905 = vmatpush1.bf16.msra.mxu0 %v5387_v5 }
 0x423   :  { %3906 = vmatprep.subr.bf16.mxu0 %v5392_v6 }
 0x426   :  { %3907 = vmatpush1.bf16.msra.mxu0 %v5390_v8 }
 0x427   :  { %3908 = vmatprep.subr.bf16.mxu0 %v5395_v9 }
 0x42a   :  { %3909 = vmatpush1.bf16.msra.mxu0 %v5393_v10 }
 0x42b   :  { %3910 = vmatprep.subr.bf16.mxu0 %v5398_v11 }
 0x42e   :  { %3911 = vmatpush1.bf16.msra.mxu0 %v5396_v12 }
 0x42f   :  { %3912 = vmatprep.subr.bf16.mxu0 %v5401_v13 }
 0x432   :  { %3913 = vmatpush1.bf16.msra.mxu0 %v5399_v15 }
 0x433   :  { %3914 = vmatprep.subr.bf16.mxu0 %v5404_v16 }
 0x436   :  { %3915 = vmatpush1.bf16.msra.mxu0 %v5402_v18 }
 0x437   :  { %3916 = vmatprep.subr.bf16.mxu0 %v5407_v19 }
 0x43a   :  { %3917 = vmatpush1.bf16.msra.mxu0 %v5405_v21 }
 0x43b   :  { %3918 = vmatprep.subr.bf16.mxu0 %v5410_v22 }
 0x43e   :  { %3919 = vmatpush1.bf16.msra.mxu0 %v5408_v17 }
 0x43f   :  { %3920 = vmatprep.subr.bf16.mxu0 %v5413_v23 }
 0x442   :  { %3921 = vmatpush1.bf16.msra.mxu0 %v5411_v24 }
 0x445   :  { %3923 = vmatmul.mubr.bf16.vlgmr.msra.gmra.mrb[12].mxu0 %v6800_v51 }
 0x498   :  { %v3760_v30 = vpop.f32.mrb[8].mxu0  ;;  %v3842_v31 = vpop.f32.mrb[16].mxu1 }
 0x499   :  { %v4674_v51 = vadd.f32 %v3760_v30, %v2501_v26  ;;  %v4676_v33 = vadd.f32 %v3842_v31, %v2509_v27  ;;  %v3762_v34 = vpop.f32.mrb[9].mxu0  ;;  %v3844_v36 = vpop.f32.mrb[17].mxu1 }
 0x49a   :  { %v4675_v39 = vadd.f32 %v3762_v34, %v2505_v28  ;;  %v4677_v14 = vadd.f32 %v3844_v36, %v2513_v29  ;;  %v3764_v43 = vpop.f32.mrb[10].mxu0  ;;  %v3846_v44 = vpop.f32.mrb[18].mxu1 }
 0x49b   :  { %v4575_v38 = vmul.f32 -1.442695, %v4674_v51  ;;  %v4577_v45 = vmul.f32 -1.442695, %v4676_v33  ;;  %v3765_v46 = vpop.f32.mrb[11].mxu0  ;;  %v3847_v7 = vpop.f32.mrb[19].mxu1 }
 0x49c   :  { %v4576_v20 = vmul.f32 -1.442695, %v4675_v39  ;;  %v4578_v47 = vmul.f32 -1.442695, %v4677_v14 }
 0x49d   :  { %5414 = vpow2.f32 %v4575_v38 }
 0x49e   :  { %5416 = vpow2.f32 %v4577_v45 }
 0x49f   :  { %5418 = vpow2.f32 %v4576_v20 }
 0x4a0   :  { %5420 = vpow2.f32 %v4578_v47 }
 0x4a7   :  { %v5415_v40 = vpop.eup %5414 }
 0x4a8   :  { %v5417_v41 = vpop.eup %5416  ;;  %v4032_v48 = vadd.f32 1.0, %v5415_v40 }
 0x4a9   :  { %v5419_v49 = vpop.eup %5418  ;;  %v4034_v50 = vadd.f32 1.0, %v5417_v41 }
 0x4aa   :  { %v5421_v52 = vpop.eup %5420  ;;  %5422 = vrcp.f32 %v4032_v48  ;;  %v4033_v53 = vadd.f32 1.0, %v5419_v49 }
 0x4ab   :  { %5424 = vrcp.f32 %v4034_v50  ;;  %v4035_v54 = vadd.f32 1.0, %v5421_v52 }
 0x4ac   :  { %5426 = vrcp.f32 %v4033_v53 }
 0x4ad   :  { %5428 = vrcp.f32 %v4035_v54 }
 0x4b4   :  { %v5423_v55 = vpop.eup %5422 }
 0x4b5   :  { %v5425_v56 = vpop.eup %5424  ;;  %4053 = vst [vmem:[#allocation2] sm:$0xff] %v5423_v55 }
 0x4b6   :  { %v5427_v57 = vpop.eup %5426  ;;  %4055 = vst [vmem:[#allocation2 + $0x10] sm:$0xff] %v5425_v56 }
 0x4b7   :  { %v5429_v58 = vpop.eup %5428  ;;  %4054 = vst [vmem:[#allocation2 + $0x8] sm:$0xff] %v5427_v57 }
 0x4b8   :  { %4056 = vst [vmem:[#allocation2 + $0x18] sm:$0xff] %v5429_v58 }
 0x4b9   :  { %v4642_v59 = vpop.f32.mrb[20].mxu1 }
 0x4ba   :  { %5453 = shalt.err (!%p5450_p4)
}
 0x4bb   :  { %s5454_s12 = scalar_lea.hbm %s7145_s10, 128 }
 0x4bc   :  { %p5455_p5 = scmp.ne.s32.totalorder %s7145_s10, %s5454_s12  ;;  %p5458_p6 = scmp.lt.u32.totalorder %s5454_s12, %s7145_s10 }
 0x4be   :  { %p5460_p7 = pnand %p5458_p6, %p5455_p5 }
 0x4c0   :  { %5463 = shalt.err (!%p5460_p7)
}
 0x4c1   :  { %4079 = dma.vmem_to_hbm [thread:$0]  %s4077_s8, 128, %s7145_s10, [#allocation5]   ;;  %v4643_v32 = vpop.f32.mrb[21].mxu1  ;;  %v2524_v42 = vsub.s32 6, %v6213_v37  ;;  %v2516_v11 = vsub.s32 4, %v6213_v37  ;;  %v2520_v12 = vsub.s32 5, %v6213_v37 }
 0x4c2   :  { %v4644_v60 = vadd.f32 %v4643_v32, %v4642_v59  ;;  %v4645_v61 = vpop.f32.mrb[22].mxu1  ;;  %s5492_s10 = smov [#allocation2]  }
 0x4c3   :  { %v4646_v35 = vpop.f32.mrb[23].mxu1  ;;  %v2525_v62 = vrot.slane %v7094_v25, %v2524_v42  ;;  %v2517_v13 = vrot.slane %v7094_v25, %v2516_v11  ;;  %v2521_v15 = vrot.slane %v7094_v25, %v2520_v12  ;;  %s4066_s17 = sshll.u32 %s5492_s10, 4  ;;  %s4067_s17 = int_to_ptr.vmem [resolvable:$true] %s4066_s17 }
 0x4c4   :  { %s5464_s4 = scalar_lea.vmem %s4067_s17, 896  ;;  %p5469_p9 = scmp.lt.s32.totalorder %s4067_s17, %s4067_s17 }
 0x4c5   :  { %v3966_v1 = vadd.f32 %v4644_v60, %v2525_v62  ;;  %p5465_p8 = scmp.ne.s32.totalorder %s4067_s17, %s5464_s4  ;;  %p5470_p10 = scmp.lt.s32.totalorder %s5464_s4, %s5464_s4 }
 0x4c7   :  { %p5471_p11 = por %p5470_p10, %p5469_p9 }
 0x4c9   :  { %p5472_p12 = pnand %p5471_p11, %p5465_p8 }
 0x4d9   :  { %v4664_v63 = vpop.f32.mrb[24].mxu1 }
 0x4da   :  { %v4665_v0 = vpop.f32.mrb[25].mxu1 }
 0x4db   :  { %v4666_v2 = vadd.f32 %v4665_v0, %v4664_v63  ;;  %v4667_v3 = vpop.f32.mrb[26].mxu1 }
 0x4dc   :  { %v4668_v4 = vpop.f32.mrb[27].mxu1 }
 0x4dd   :  { %v4006_v5 = vadd.f32 %v4666_v2, %v3966_v1 }
 0x4df   :  { %v4581_v6 = vmul.f32 -1.442695, %v4006_v5 }
 0x4e1   :  { %5430 = vpow2.f32 %v4581_v6 }
 0x4eb   :  { %v5431_v8 = vpop.eup %5430 }
 0x4ec   :  { %v4038_v9 = vadd.f32 1.0, %v5431_v8 }
 0x4ee   :  { %5432 = vrcp.f32 %v4038_v9 }
 0x4f8   :  { %v5433_v10 = vpop.eup %5432 }
 0x4f9   :  { %4059 = vst.msk [vmem:[#allocation2 + $0x30] sm:$0xff] %vm1249_vm0, %v5433_v10 }
 0x518   :  { %v3924_v16 = vpop.f32.mrb[12].mxu0 }
 0x519   :  { %v4678_v18 = vadd.f32 %v3924_v16, %v2517_v13  ;;  %v3926_v19 = vpop.f32.mrb[13].mxu0 }
 0x51a   :  { %v4679_v21 = vadd.f32 %v3926_v19, %v2521_v15  ;;  %v3928_v22 = vpop.f32.mrb[14].mxu0 }
 0x51b   :  { %v4579_v17 = vmul.f32 -1.442695, %v4678_v18  ;;  %v3929_v23 = vpop.f32.mrb[15].mxu0 }
 0x51c   :  { %v4580_v24 = vmul.f32 -1.442695, %v4679_v21 }
 0x51d   :  { %5434 = vpow2.f32 %v4579_v17 }
 0x51e   :  { %5436 = vpow2.f32 %v4580_v24 }
 0x527   :  { %v5435_v26 = vpop.eup %5434 }
 0x528   :  { %v5437_v27 = vpop.eup %5436  ;;  %v4036_v28 = vadd.f32 1.0, %v5435_v26 }
 0x529   :  { %v4037_v29 = vadd.f32 1.0, %v5437_v27 }
 0x52a   :  { %5438 = vrcp.f32 %v4036_v28 }
 0x52b   :  { %5440 = vrcp.f32 %v4037_v29 }
 0x534   :  { %v5439_v37 = vpop.eup %5438 }
 0x535   :  { %v5441_v25 = vpop.eup %5440  ;;  %4057 = vst [vmem:[#allocation2 + $0x20] sm:$0xff] %v5439_v37 }
 0x536   :  { %4058 = vst [vmem:[#allocation2 + $0x28] sm:$0xff] %v5441_v25 }
 0x537   :  { %5475 = shalt.err (!%p5472_p12)
}
 0x538   :  { %s5476_s1 = scalar_lea.hbm %s7144_s9, 896 }
 0x539   :  { %p5477_p13 = scmp.ne.s32.totalorder %s7144_s9, %s5476_s1  ;;  %p5480_p0 = scmp.lt.u32.totalorder %s5476_s1, %s7144_s9 }
 0x53b   :  { %p5482_p1 = pnand %p5480_p0, %p5477_p13 }
 0x53d   :  { %5485 = shalt.err (!%p5482_p1)
}
 0x53e   :  { %4069 = dma.vmem_to_hbm [thread:$0]  %s4067_s17, 896, %s7144_s9, [#allocation3]  }
 0x53f   :  { %5486 = dma.done.wait [#allocation3], 896  }
 0x540   :  { %5487 = vsyncadd [#allocation3], 4294966400 }
 0x541   :  { %5488 = dma.done.wait [#allocation5], 128  }
 0x542   :  { %5489 = vsyncadd [#allocation5], 4294967168 }
 0x543   :  { %4086 = vsyncpa [#allocation3], 1 }
 0x544   :  { %4087 = vsyncpa [#allocation5], 1 }

</bundles_post_ra>
